<compile_context>
chip_gen: v7x
topology: tpu7x:2x2x1
jax: 0.10.0
libtpu: 0.0.40
codegen_flags: <defaults>
</compile_context>

<pallas_src>
import jax
import jax.numpy as jnp
from jax.experimental import pallas as pl
from jax.experimental.pallas import tpu as pltpu

P_DROP = 0.25
N_SAMPLES = 4
H_PAD = 1024      # 1000 padded up to a multiple of 128
HB = 256          # H tile -> grid of 4 steps


def _msd_kernel(x_ref, w1_ref, b1_ref, w2_ref, b2_ref, u_ref, o_ref, acc_ref):
    k = pl.program_id(0)

    @pl.when(k == 0)
    def _():
        acc_ref[...] = jnp.zeros_like(acc_ref)

    # First linear, current H-chunk: (B, F) @ (F, HB) + (1, HB)
    h = jnp.dot(x_ref[...], w1_ref[...], preferred_element_type=jnp.float32)
    h = h + b1_ref[...]

    # Multi-sample dropout, averaged:
    #   mean_s Dropout_s(h) == h * keep_count / (N_SAMPLES * (1 - p))
    # keep_count is accumulated from N_SAMPLES independent uniform draws.
    count = (u_ref[0] >= P_DROP).astype(jnp.float32)
    for s in range(1, N_SAMPLES):          # unrolled, 3 adds
        count = count + (u_ref[s] >= P_DROP).astype(jnp.float32)
    h_avg = h * (count * (1.0 / (N_SAMPLES * (1.0 - P_DROP))))

    # Partial second linear: accumulate (B, HB) @ (HB, C) across the H grid.
    acc_ref[...] += jnp.dot(h_avg, w2_ref[...], preferred_element_type=jnp.float32)

    @pl.when(k == pl.num_programs(0) - 1)
    def _():
        o_ref[...] = acc_ref[...] + b2_ref[...]


@jax.jit
def multi_sample_dropout_forward(x, w1, b1, w2, b2, key):
    """x:(B,F)  w1:(F,H)  b1:(1,H)  w2:(H,C)  b2:(1,C)  (weights pre-transposed)."""
    B, F = x.shape
    H = w1.shape[1]
    C = w2.shape[1]
    pad = H_PAD - H

    # Zero-pad H so every tile is (8,128)-aligned; padded h lanes are 0 and the
    # matching w2 rows are 0, so padding contributes exactly nothing.
    w1p = jnp.pad(w1, ((0, 0), (0, pad)))
    b1p = jnp.pad(b1, ((0, 0), (0, pad)))
    w2p = jnp.pad(w2, ((0, pad), (0, 0)))

    # Dropout randomness drawn host-side (distributionally equivalent to
    # torch's RNG stream, not bitwise identical).
    u = jax.random.uniform(key, (N_SAMPLES, B, H_PAD), dtype=jnp.float32)

    return pl.pallas_call(
        _msd_kernel,
        out_shape=jax.ShapeDtypeStruct((B, C), jnp.float32),
        grid_spec=pltpu.PrefetchScalarGridSpec(
            num_scalar_prefetch=0,
            grid=(H_PAD // HB,),
            in_specs=[
                pl.BlockSpec((B, F), lambda k: (0, 0)),                 # x (resident)
                pl.BlockSpec((F, HB), lambda k: (0, k)),                # w1 chunk
                pl.BlockSpec((1, HB), lambda k: (0, k)),                # b1 chunk
                pl.BlockSpec((HB, C), lambda k: (k, 0)),                # w2 chunk
                pl.BlockSpec((1, C), lambda k: (0, 0)),                 # b2
                pl.BlockSpec((N_SAMPLES, B, HB), lambda k: (0, 0, k)),  # uniforms chunk
            ],
            out_specs=pl.BlockSpec((B, C), lambda k: (0, 0)),
            scratch_shapes=[pltpu.VMEM((B, C), jnp.float32)],
        ),
        compiler_params=pltpu.CompilerParams(
            dimension_semantics=("arbitrary",),   # reduction over H chunks
        ),
    )(x, w1p, b1p, w2p, b2, u)


if __name__ == "__main__":
    # model_name contains 'vit' -> your_layer = Linear(768, 1000); num_classes = 3
    B, F, H, C = 8, 768, 1000, 3

    key = jax.random.PRNGKey(0)
    kx, kw1, kb1, kw2, kb2, kd = jax.random.split(key, 6)

    x = jax.random.normal(kx, (B, F), dtype=jnp.float32)
    # Deterministic synthetic parameters (Linear stored pre-transposed: (in, out)).
    w1 = jax.random.normal(kw1, (F, H), dtype=jnp.float32) * (1.0 / jnp.sqrt(F))
    b1 = jax.random.normal(kb1, (1, H), dtype=jnp.float32) * 0.02
    w2 = jax.random.normal(kw2, (H, C), dtype=jnp.float32) * (1.0 / jnp.sqrt(H))
    b2 = jax.random.normal(kb2, (1, C), dtype=jnp.float32) * 0.02

    out = multi_sample_dropout_forward(x, w1, b1, w2, b2, kd)
    out = jax.block_until_ready(out)
    assert out.shape == (B, C) and out.dtype == jnp.float32
    assert bool(jnp.all(jnp.isfinite(out)))

    # Pure-JAX reference mirroring the PyTorch per-sample formulation,
    # using the identical host-drawn dropout masks.
    u = jax.random.uniform(kd, (N_SAMPLES, B, H_PAD), dtype=jnp.float32)[:, :, :H]
    h_ref = x @ w1 + b1
    samples = [(h_ref * (u[s] >= P_DROP) / (1.0 - P_DROP)) @ w2 + b2
               for s in range(N_SAMPLES)]
    ref = jnp.mean(jnp.stack(samples, axis=0), axis=0)
    assert bool(jnp.allclose(out, ref, rtol=5e-2, atol=5e-2))

    print("KERNEL_OK")
</pallas_src>

<mosaic_0001>
module attributes {stable_mosaic.version = 11 : i64} {
  func.func @_msd_kernel(%arg0: i32, %arg1: memref<8x768xf32, #tpu.memory_space<vmem>>, %arg2: memref<768x256xf32, #tpu.memory_space<vmem>>, %arg3: memref<1x256xf32, #tpu.memory_space<vmem>>, %arg4: memref<256x3xf32, #tpu.memory_space<vmem>>, %arg5: memref<1x3xf32, #tpu.memory_space<vmem>>, %arg6: memref<4x8x256xf32, #tpu.memory_space<vmem>>, %arg7: memref<8x3xf32, #tpu.memory_space<vmem>>, %arg8: memref<8x3xf32, #tpu.memory_space<vmem>>) attributes {dimension_semantics = [#tpu.dimension_semantics<arbitrary>], iteration_bounds = array<i64: 4>, scalar_prefetch = 0 : i64, scratch_operands = 1 : i64, tpu.core_type = #tpu.core_type<tc>, window_params = [{pipeline_mode = #tpu.pipeline_mode<synchronous>, transform_indices = @transform_0, window_bounds = array<i64: 8, 768>}, {transform_indices = @transform_1, window_bounds = array<i64: 768, 256>}, {transform_indices = @transform_2, window_bounds = array<i64: 1, 256>}, {transform_indices = @transform_3, window_bounds = array<i64: 256, 3>}, {pipeline_mode = #tpu.pipeline_mode<synchronous>, transform_indices = @transform_4, window_bounds = array<i64: 1, 3>}, {transform_indices = @transform_5, window_bounds = array<i64: 4, 8, 256>}, {pipeline_mode = #tpu.pipeline_mode<synchronous>, transform_indices = @transform_6, window_bounds = array<i64: 8, 3>}]} {
    %c0_i32 = arith.constant 0 : i32
    %0 = arith.cmpi eq, %arg0, %c0_i32 : i32
    %1 = arith.extui %0 : i1 to i32
    %c0_i32_0 = arith.constant 0 : i32
    %2 = arith.cmpi ne, %1, %c0_i32_0 : i32
    scf.if %2 {
      %cst_28 = arith.constant 0.000000e+00 : f32
      %47 = vector.broadcast %cst_28 : f32 to vector<8x3xf32>
      %c0_29 = arith.constant 0 : index
      %c0_30 = arith.constant 0 : index
      %48 = vector.load %arg8[%c0_29, %c0_30] : memref<8x3xf32, #tpu.memory_space<vmem>>, vector<8x3xf32>
      tpu.vector_store %arg8[%c0_29, %c0_30], %47 {strides = array<i32>} : memref<8x3xf32, #tpu.memory_space<vmem>>, vector<8x3xf32>,
    } else {
    }
    %c0 = arith.constant 0 : index
    %c0_1 = arith.constant 0 : index
    %3 = vector.load %arg1[%c0, %c0_1] : memref<8x768xf32, #tpu.memory_space<vmem>>, vector<8x768xf32>
    %c0_2 = arith.constant 0 : index
    %c0_3 = arith.constant 0 : index
    %4 = vector.load %arg2[%c0_2, %c0_3] : memref<768x256xf32, #tpu.memory_space<vmem>>, vector<768x256xf32>
    %cst = arith.constant dense<0.000000e+00> : vector<8x256xf32>
    %5 = tpu.matmul %3, %4, %cst {dimension_numbers = #tpu.dot_dimension_numbers<[1], [0], [0], [1], [0, 0, 1, 1], [], []>} : vector<8x768xf32>, vector<768x256xf32>, vector<8x256xf32> -> vector<8x256xf32>
    %c0_4 = arith.constant 0 : index
    %c0_5 = arith.constant 0 : index
    %6 = vector.load %arg3[%c0_4, %c0_5] : memref<1x256xf32, #tpu.memory_space<vmem>>, vector<1x256xf32>
    %7 = vector.broadcast %6 : vector<1x256xf32> to vector<8x256xf32>
    %8 = arith.addf %5, %7 : vector<8x256xf32>
    %c0_6 = arith.constant 0 : index
    %c0_7 = arith.constant 0 : index
    %c0_8 = arith.constant 0 : index
    %9 = vector.load %arg6[%c0_6, %c0_7, %c0_8] : memref<4x8x256xf32, #tpu.memory_space<vmem>>, vector<1x8x256xf32>
    %10 = vector.shape_cast %9 : vector<1x8x256xf32> to vector<8x256xf32>
    %cst_9 = arith.constant 2.500000e-01 : f32
    %11 = vector.broadcast %cst_9 : f32 to vector<8x256xf32>
    %12 = arith.cmpf oge, %10, %11 : vector<8x256xf32>
    %13 = arith.extui %12 : vector<8x256xi1> to vector<8x256xi32>
    %14 = arith.sitofp %13 : vector<8x256xi32> to vector<8x256xf32>
    %c1 = arith.constant 1 : index
    %c0_10 = arith.constant 0 : index
    %c0_11 = arith.constant 0 : index
    %15 = vector.load %arg6[%c1, %c0_10, %c0_11] : memref<4x8x256xf32, #tpu.memory_space<vmem>>, vector<1x8x256xf32>
    %16 = vector.shape_cast %15 : vector<1x8x256xf32> to vector<8x256xf32>
    %cst_12 = arith.constant 2.500000e-01 : f32
    %17 = vector.broadcast %cst_12 : f32 to vector<8x256xf32>
    %18 = arith.cmpf oge, %16, %17 : vector<8x256xf32>
    %19 = arith.extui %18 : vector<8x256xi1> to vector<8x256xi32>
    %20 = arith.sitofp %19 : vector<8x256xi32> to vector<8x256xf32>
    %21 = arith.addf %14, %20 : vector<8x256xf32>
    %c2 = arith.constant 2 : index
    %c0_13 = arith.constant 0 : index
    %c0_14 = arith.constant 0 : index
    %22 = vector.load %arg6[%c2, %c0_13, %c0_14] : memref<4x8x256xf32, #tpu.memory_space<vmem>>, vector<1x8x256xf32>
    %23 = vector.shape_cast %22 : vector<1x8x256xf32> to vector<8x256xf32>
    %cst_15 = arith.constant 2.500000e-01 : f32
    %24 = vector.broadcast %cst_15 : f32 to vector<8x256xf32>
    %25 = arith.cmpf oge, %23, %24 : vector<8x256xf32>
    %26 = arith.extui %25 : vector<8x256xi1> to vector<8x256xi32>
    %27 = arith.sitofp %26 : vector<8x256xi32> to vector<8x256xf32>
    %28 = arith.addf %21, %27 : vector<8x256xf32>
    %c3 = arith.constant 3 : index
    %c0_16 = arith.constant 0 : index
    %c0_17 = arith.constant 0 : index
    %29 = vector.load %arg6[%c3, %c0_16, %c0_17] : memref<4x8x256xf32, #tpu.memory_space<vmem>>, vector<1x8x256xf32>
    %30 = vector.shape_cast %29 : vector<1x8x256xf32> to vector<8x256xf32>
    %cst_18 = arith.constant 2.500000e-01 : f32
    %31 = vector.broadcast %cst_18 : f32 to vector<8x256xf32>
    %32 = arith.cmpf oge, %30, %31 : vector<8x256xf32>
    %33 = arith.extui %32 : vector<8x256xi1> to vector<8x256xi32>
    %34 = arith.sitofp %33 : vector<8x256xi32> to vector<8x256xf32>
    %35 = arith.addf %28, %34 : vector<8x256xf32>
    %cst_19 = arith.constant 0.333333343 : f32
    %36 = vector.broadcast %cst_19 : f32 to vector<8x256xf32>
    %37 = arith.mulf %35, %36 : vector<8x256xf32>
    %38 = arith.mulf %8, %37 : vector<8x256xf32>
    %c0_20 = arith.constant 0 : index
    %c0_21 = arith.constant 0 : index
    %39 = vector.load %arg8[%c0_20, %c0_21] : memref<8x3xf32, #tpu.memory_space<vmem>>, vector<8x3xf32>
    %c0_22 = arith.constant 0 : index
    %c0_23 = arith.constant 0 : index
    %40 = vector.load %arg4[%c0_22, %c0_23] : memref<256x3xf32, #tpu.memory_space<vmem>>, vector<256x3xf32>
    %cst_24 = arith.constant dense<0.000000e+00> : vector<8x3xf32>
    %41 = tpu.matmul %38, %40, %cst_24 {dimension_numbers = #tpu.dot_dimension_numbers<[1], [0], [0], [1], [0, 0, 1, 1], [], []>} : vector<8x256xf32>, vector<256x3xf32>, vector<8x3xf32> -> vector<8x3xf32>
    %42 = arith.addf %39, %41 : vector<8x3xf32>
    %c0_25 = arith.constant 0 : index
    %c0_26 = arith.constant 0 : index
    %43 = vector.load %arg8[%c0_25, %c0_26] : memref<8x3xf32, #tpu.memory_space<vmem>>, vector<8x3xf32>
    tpu.vector_store %arg8[%c0_25, %c0_26], %42 {strides = array<i32>} : memref<8x3xf32, #tpu.memory_space<vmem>>, vector<8x3xf32>,
    %c3_i32 = arith.constant 3 : i32
    %44 = arith.cmpi eq, %arg0, %c3_i32 : i32
    %45 = arith.extui %44 : i1 to i32
    %c0_i32_27 = arith.constant 0 : i32
    %46 = arith.cmpi ne, %45, %c0_i32_27 : i32
    scf.if %46 {
      %c0_28 = arith.constant 0 : index
      %c0_29 = arith.constant 0 : index
      %47 = vector.load %arg8[%c0_28, %c0_29] : memref<8x3xf32, #tpu.memory_space<vmem>>, vector<8x3xf32>
      %c0_30 = arith.constant 0 : index
      %c0_31 = arith.constant 0 : index
      %48 = vector.load %arg5[%c0_30, %c0_31] : memref<1x3xf32, #tpu.memory_space<vmem>>, vector<1x3xf32>
      %49 = vector.broadcast %48 : vector<1x3xf32> to vector<8x3xf32>
      %50 = arith.addf %47, %49 : vector<8x3xf32>
      %c0_32 = arith.constant 0 : index
      %c0_33 = arith.constant 0 : index
      %51 = vector.load %arg7[%c0_32, %c0_33] : memref<8x3xf32, #tpu.memory_space<vmem>>, vector<8x3xf32>
      tpu.vector_store %arg7[%c0_32, %c0_33], %50 {strides = array<i32>} : memref<8x3xf32, #tpu.memory_space<vmem>>, vector<8x3xf32>,
    } else {
    }
    return
  }
  func.func @transform_0(%arg0: i32) -> (i32, i32) {
    %c0_i32 = arith.constant 0 : i32
    %c0_i32_0 = arith.constant 0 : i32
    %c0_i32_1 = arith.constant 0 : i32
    return %c0_i32, %c0_i32_0 : i32, i32
  }
  func.func @transform_1(%arg0: i32) -> (i32, i32) {
    %c0_i32 = arith.constant 0 : i32
    %c0_i32_0 = arith.constant 0 : i32
    return %c0_i32, %arg0 : i32, i32
  }
  func.func @transform_2(%arg0: i32) -> (i32, i32) {
    %c0_i32 = arith.constant 0 : i32
    %c0_i32_0 = arith.constant 0 : i32
    return %c0_i32, %arg0 : i32, i32
  }
  func.func @transform_3(%arg0: i32) -> (i32, i32) {
    %c0_i32 = arith.constant 0 : i32
    %c0_i32_0 = arith.constant 0 : i32
    return %arg0, %c0_i32 : i32, i32
  }
  func.func @transform_4(%arg0: i32) -> (i32, i32) {
    %c0_i32 = arith.constant 0 : i32
    %c0_i32_0 = arith.constant 0 : i32
    %c0_i32_1 = arith.constant 0 : i32
    return %c0_i32, %c0_i32_0 : i32, i32
  }
  func.func @transform_5(%arg0: i32) -> (i32, i32, i32) {
    %c0_i32 = arith.constant 0 : i32
    %c0_i32_0 = arith.constant 0 : i32
    %c0_i32_1 = arith.constant 0 : i32
    return %c0_i32, %c0_i32_0, %arg0 : i32, i32, i32
  }
  func.func @transform_6(%arg0: i32) -> (i32, i32) {
    %c0_i32 = arith.constant 0 : i32
    %c0_i32_0 = arith.constant 0 : i32
    %c0_i32_1 = arith.constant 0 : i32
    return %c0_i32, %c0_i32_0 : i32, i32
  }
}

</mosaic_0001>

<bundles_post_ra>
// kernel: multi_sample_dropout_forward.1
= control target key start
LH: loop header
LB: loop body
LE: loop exit
PB: predicated region body
PF: predicated region fallthrough
CT: control target
= control target key end

     0   :  { %s1791_s21 = smov 0   ;;  %s1793_s22 = smov 0   ;;  %s2521_s0 = inlined_call_operand.vmem [shape: f32[8,768], index: 0, kind: input, shape index: {}]   ;;  %s2522_s1 = inlined_call_operand.vmem [shape: f32[768,1024], index: 1, kind: input, shape index: {}]   ;;  %s2523_s2 = inlined_call_operand.vmem [shape: f32[1,1024], index: 2, kind: input, shape index: {}]   ;;  %s2524_s3 = inlined_call_operand.vmem [shape: f32[1024,3], index: 3, kind: input, shape index: {}]   ;;  %s2525_s4 = inlined_call_operand.vmem [shape: f32[1,3], index: 4, kind: input, shape index: {}]   ;;  %s2526_s5 = inlined_call_operand.vmem [shape: f32[4,8,1024], index: 5, kind: input, shape index: {}]   ;;  %s2527_s6 = inlined_call_operand.vmem [shape: f32[8,3], index: 6, kind: output, shape index: {}]  }
   0x1   :  { %s1795_s23 = smov 0  }
   0x2 LB: > { %s1807_s24 = sadd.s32 4294967295, %s1752_s23   ;;  %s1810_s25 = sadd.s32 1, %s1752_s23   ;;  %s1752_s23 = sphi %s1795_s23, %s2531_s23   ;;  %s1748_s22 = sphi %s1793_s22, %s2530_s22   ;;  %s1744_s21 = sphi %s1791_s21, %s2529_s21  }
   0x3   : > { %s41_s26 = ssub.s32 %s1752_s23, %s1810_s25  ;;  %s44_s27 = sadd.s32 1, %s1748_s22 }
   0x4   : > { %p42_p0 = scmp.eq.s32.totalorder %s41_s26, 0  ;;  %p51_p1 = scmp.ne.s32.totalorder %s1748_s22, %s1744_s21 }
   0x5   : > { %p52_p2 = scmp.eq.s32.totalorder %s1752_s23, 0  ;;  %p1405_p4 = scmp.ge.s32.totalorder %s1752_s23, 4 }
   0x6   : > { %s1819_s28 = scalar_select %p42_p0, %s1748_s22, %s44_s27  }
   0x7   : > { %p1821_p3 = por %p52_p2, %p51_p1  ;;  %203 = sbr.rel (%p1405_p4) target bundleno = 122 (0x7a), region = 24 }
   0xe   : > { %206 = sbr.rel (!%p1821_p3) target bundleno = 114 (0x72), region = 28  ;;  %s208_s30 = sand.u32 (%p1821_p3), 1, %s1748_s22  }
   0xf   : > { %s1435_s7 = sshll.u32 (%p1821_p3), %s1752_s23, 4  ;;  %s1702_s8 = smul.u32 (%p1821_p3), 1536, %s208_s30 }
  0x10   : > { %s1833_s11 = scalar_lea.vmem (%p1821_p3), %s2522_s1, %s1435_s7 }
  0x11   : > { %v226_v0 = vld [vmem:[%s1833_s11] sm:$0xff] (%p1821_p3)  ;;  %v228_v1 = vld [vmem:[%s1833_s11 + $0x8] sm:$0xff] (%p1821_p3)  ;;  %s1841_s12 = scalar_lea.vmem (%p1821_p3), [#allocation3], %s1702_s8 }
  0x12   : > { %v230_v2 = vld [vmem:[%s1833_s11 + $0x40] sm:$0xff] (%p1821_p3)  ;;  %v232_v3 = vld [vmem:[%s1833_s11 + $0x48] sm:$0xff] (%p1821_p3)  ;;  %227 = vst [vmem:[%s1841_s12] sm:$0xff] (%p1821_p3), %v226_v0  ;;  %229 = vst [vmem:[%s1841_s12 + $0x8] sm:$0xff] (%p1821_p3), %v228_v1 }
  0x13   : > { %v234_v4 = vld [vmem:[%s1833_s11 + $0x80] sm:$0xff] (%p1821_p3)  ;;  %v236_v5 = vld [vmem:[%s1833_s11 + $0x88] sm:$0xff] (%p1821_p3)  ;;  %231 = vst [vmem:[%s1841_s12 + $0x10] sm:$0xff] (%p1821_p3), %v230_v2  ;;  %233 = vst [vmem:[%s1841_s12 + $0x18] sm:$0xff] (%p1821_p3), %v232_v3 }
  0x14   : > { %235 = vst [vmem:[%s1841_s12 + $0x20] sm:$0xff] (%p1821_p3), %v234_v4  ;;  %237 = vst [vmem:[%s1841_s12 + $0x28] sm:$0xff] (%p1821_p3), %v236_v5  ;;  %v238_v6 = vld [vmem:[%s1833_s11 + $0xc0] sm:$0xff] (%p1821_p3)  ;;  %v240_v7 = vld [vmem:[%s1833_s11 + $0xc8] sm:$0xff] (%p1821_p3) }
  0x15   : > { %v242_v8 = vld [vmem:[%s1833_s11 + $0x100] sm:$0xff]  ;;  %239 = vst [vmem:[%s1841_s12 + $0x30] sm:$0xff] %v238_v6  ;;  %241 = vst [vmem:[%s1841_s12 + $0x38] sm:$0xff] %v240_v7  ;;  %v244_v9 = vld [vmem:[%s1833_s11 + $0x108] sm:$0xff] }
  0x16   : > { %243 = vst [vmem:[%s1841_s12 + $0x40] sm:$0xff] %v242_v8  ;;  %v246_v10 = vld [vmem:[%s1833_s11 + $0x140] sm:$0xff]  ;;  %v248_v11 = vld [vmem:[%s1833_s11 + $0x148] sm:$0xff]  ;;  %245 = vst [vmem:[%s1841_s12 + $0x48] sm:$0xff] %v244_v9 }
  0x17   : > { %247 = vst [vmem:[%s1841_s12 + $0x50] sm:$0xff] %v246_v10  ;;  %249 = vst [vmem:[%s1841_s12 + $0x58] sm:$0xff] %v248_v11  ;;  %v250_v12 = vld [vmem:[%s1833_s11 + $0x180] sm:$0xff]  ;;  %v252_v13 = vld [vmem:[%s1833_s11 + $0x188] sm:$0xff] }
  0x18   : > { %v254_v14 = vld [vmem:[%s1833_s11 + $0x1c0] sm:$0xff]  ;;  %251 = vst [vmem:[%s1841_s12 + $0x60] sm:$0xff] %v250_v12  ;;  %253 = vst [vmem:[%s1841_s12 + $0x68] sm:$0xff] %v252_v13  ;;  %v256_v15 = vld [vmem:[%s1833_s11 + $0x1c8] sm:$0xff] }
  0x19   : > { %255 = vst [vmem:[%s1841_s12 + $0x70] sm:$0xff] %v254_v14  ;;  %v258_v16 = vld [vmem:[%s1833_s11 + $0x200] sm:$0xff]  ;;  %v260_v17 = vld [vmem:[%s1833_s11 + $0x208] sm:$0xff]  ;;  %257 = vst [vmem:[%s1841_s12 + $0x78] sm:$0xff] %v256_v15 }
  0x1a   : > { %259 = vst [vmem:[%s1841_s12 + $0x80] sm:$0xff] %v258_v16  ;;  %261 = vst [vmem:[%s1841_s12 + $0x88] sm:$0xff] %v260_v17  ;;  %v262_v18 = vld [vmem:[%s1833_s11 + $0x240] sm:$0xff]  ;;  %v264_v19 = vld [vmem:[%s1833_s11 + $0x248] sm:$0xff] }
  0x1b   : > { %v266_v20 = vld [vmem:[%s1833_s11 + $0x280] sm:$0xff]  ;;  %263 = vst [vmem:[%s1841_s12 + $0x90] sm:$0xff] %v262_v18  ;;  %265 = vst [vmem:[%s1841_s12 + $0x98] sm:$0xff] %v264_v19  ;;  %v268_v21 = vld [vmem:[%s1833_s11 + $0x288] sm:$0xff] }
  0x1c   : > { %267 = vst [vmem:[%s1841_s12 + $0xa0] sm:$0xff] %v266_v20  ;;  %v270_v22 = vld [vmem:[%s1833_s11 + $0x2c0] sm:$0xff]  ;;  %v272_v23 = vld [vmem:[%s1833_s11 + $0x2c8] sm:$0xff]  ;;  %269 = vst [vmem:[%s1841_s12 + $0xa8] sm:$0xff] %v268_v21 }
  0x1d   : > { %271 = vst [vmem:[%s1841_s12 + $0xb0] sm:$0xff] %v270_v22  ;;  %273 = vst [vmem:[%s1841_s12 + $0xb8] sm:$0xff] %v272_v23  ;;  %v274_v24 = vld [vmem:[%s1833_s11 + $0x300] sm:$0xff]  ;;  %v276_v25 = vld [vmem:[%s1833_s11 + $0x308] sm:$0xff] }
  0x1e   : > { %v278_v26 = vld [vmem:[%s1833_s11 + $0x340] sm:$0xff]  ;;  %275 = vst [vmem:[%s1841_s12 + $0xc0] sm:$0xff] %v274_v24  ;;  %277 = vst [vmem:[%s1841_s12 + $0xc8] sm:$0xff] %v276_v25  ;;  %v280_v27 = vld [vmem:[%s1833_s11 + $0x348] sm:$0xff] }
  0x1f   : > { %279 = vst [vmem:[%s1841_s12 + $0xd0] sm:$0xff] %v278_v26  ;;  %v282_v28 = vld [vmem:[%s1833_s11 + $0x380] sm:$0xff]  ;;  %v284_v29 = vld [vmem:[%s1833_s11 + $0x388] sm:$0xff]  ;;  %281 = vst [vmem:[%s1841_s12 + $0xd8] sm:$0xff] %v280_v27 }
  0x20   : > { %283 = vst [vmem:[%s1841_s12 + $0xe0] sm:$0xff] %v282_v28  ;;  %285 = vst [vmem:[%s1841_s12 + $0xe8] sm:$0xff] %v284_v29  ;;  %v286_v30 = vld [vmem:[%s1833_s11 + $0x3c0] sm:$0xff]  ;;  %v288_v31 = vld [vmem:[%s1833_s11 + $0x3c8] sm:$0xff] }
  0x21   : > { %v290_v32 = vld [vmem:[%s1833_s11 + $0x400] sm:$0xff]  ;;  %287 = vst [vmem:[%s1841_s12 + $0xf0] sm:$0xff] %v286_v30  ;;  %289 = vst [vmem:[%s1841_s12 + $0xf8] sm:$0xff] %v288_v31  ;;  %v292_v33 = vld [vmem:[%s1833_s11 + $0x408] sm:$0xff] }
  0x22   : > { %291 = vst [vmem:[%s1841_s12 + $0x100] sm:$0xff] %v290_v32  ;;  %v294_v34 = vld [vmem:[%s1833_s11 + $0x440] sm:$0xff]  ;;  %v296_v35 = vld [vmem:[%s1833_s11 + $0x448] sm:$0xff]  ;;  %293 = vst [vmem:[%s1841_s12 + $0x108] sm:$0xff] %v292_v33 }
  0x23   : > { %295 = vst [vmem:[%s1841_s12 + $0x110] sm:$0xff] %v294_v34  ;;  %297 = vst [vmem:[%s1841_s12 + $0x118] sm:$0xff] %v296_v35  ;;  %v298_v36 = vld [vmem:[%s1833_s11 + $0x480] sm:$0xff]  ;;  %v300_v37 = vld [vmem:[%s1833_s11 + $0x488] sm:$0xff] }
  0x24   : > { %v302_v38 = vld [vmem:[%s1833_s11 + $0x4c0] sm:$0xff]  ;;  %299 = vst [vmem:[%s1841_s12 + $0x120] sm:$0xff] %v298_v36  ;;  %301 = vst [vmem:[%s1841_s12 + $0x128] sm:$0xff] %v300_v37  ;;  %v304_v39 = vld [vmem:[%s1833_s11 + $0x4c8] sm:$0xff] }
  0x25   : > { %303 = vst [vmem:[%s1841_s12 + $0x130] sm:$0xff] %v302_v38  ;;  %v306_v40 = vld [vmem:[%s1833_s11 + $0x500] sm:$0xff]  ;;  %v308_v41 = vld [vmem:[%s1833_s11 + $0x508] sm:$0xff]  ;;  %305 = vst [vmem:[%s1841_s12 + $0x138] sm:$0xff] %v304_v39 }
  0x26   : > { %307 = vst [vmem:[%s1841_s12 + $0x140] sm:$0xff] %v306_v40  ;;  %309 = vst [vmem:[%s1841_s12 + $0x148] sm:$0xff] %v308_v41  ;;  %v310_v42 = vld [vmem:[%s1833_s11 + $0x540] sm:$0xff]  ;;  %v312_v43 = vld [vmem:[%s1833_s11 + $0x548] sm:$0xff] }
  0x27   : > { %v314_v44 = vld [vmem:[%s1833_s11 + $0x580] sm:$0xff]  ;;  %311 = vst [vmem:[%s1841_s12 + $0x150] sm:$0xff] %v310_v42  ;;  %313 = vst [vmem:[%s1841_s12 + $0x158] sm:$0xff] %v312_v43  ;;  %v316_v45 = vld [vmem:[%s1833_s11 + $0x588] sm:$0xff] }
  0x28   : > { %315 = vst [vmem:[%s1841_s12 + $0x160] sm:$0xff] %v314_v44  ;;  %v318_v46 = vld [vmem:[%s1833_s11 + $0x5c0] sm:$0xff]  ;;  %v320_v47 = vld [vmem:[%s1833_s11 + $0x5c8] sm:$0xff]  ;;  %317 = vst [vmem:[%s1841_s12 + $0x168] sm:$0xff] %v316_v45 }
  0x29   : > { %319 = vst [vmem:[%s1841_s12 + $0x170] sm:$0xff] %v318_v46  ;;  %321 = vst [vmem:[%s1841_s12 + $0x178] sm:$0xff] %v320_v47  ;;  %v322_v48 = vld [vmem:[%s1833_s11 + $0x600] sm:$0xff]  ;;  %v324_v49 = vld [vmem:[%s1833_s11 + $0x608] sm:$0xff] }
  0x2a   : > { %v326_v50 = vld [vmem:[%s1833_s11 + $0x640] sm:$0xff]  ;;  %323 = vst [vmem:[%s1841_s12 + $0x180] sm:$0xff] %v322_v48  ;;  %325 = vst [vmem:[%s1841_s12 + $0x188] sm:$0xff] %v324_v49  ;;  %v328_v51 = vld [vmem:[%s1833_s11 + $0x648] sm:$0xff] }
  0x2b   : > { %327 = vst [vmem:[%s1841_s12 + $0x190] sm:$0xff] %v326_v50  ;;  %v330_v52 = vld [vmem:[%s1833_s11 + $0x680] sm:$0xff]  ;;  %v332_v53 = vld [vmem:[%s1833_s11 + $0x688] sm:$0xff]  ;;  %329 = vst [vmem:[%s1841_s12 + $0x198] sm:$0xff] %v328_v51 }
  0x2c   : > { %331 = vst [vmem:[%s1841_s12 + $0x1a0] sm:$0xff] %v330_v52  ;;  %333 = vst [vmem:[%s1841_s12 + $0x1a8] sm:$0xff] %v332_v53  ;;  %v334_v54 = vld [vmem:[%s1833_s11 + $0x6c0] sm:$0xff]  ;;  %v336_v55 = vld [vmem:[%s1833_s11 + $0x6c8] sm:$0xff] }
  0x2d   : > { %v338_v56 = vld [vmem:[%s1833_s11 + $0x700] sm:$0xff]  ;;  %335 = vst [vmem:[%s1841_s12 + $0x1b0] sm:$0xff] %v334_v54  ;;  %337 = vst [vmem:[%s1841_s12 + $0x1b8] sm:$0xff] %v336_v55  ;;  %v340_v57 = vld [vmem:[%s1833_s11 + $0x708] sm:$0xff] }
  0x2e   : > { %339 = vst [vmem:[%s1841_s12 + $0x1c0] sm:$0xff] %v338_v56  ;;  %v342_v58 = vld [vmem:[%s1833_s11 + $0x740] sm:$0xff]  ;;  %v344_v59 = vld [vmem:[%s1833_s11 + $0x748] sm:$0xff]  ;;  %341 = vst [vmem:[%s1841_s12 + $0x1c8] sm:$0xff] %v340_v57 }
  0x2f   : > { %343 = vst [vmem:[%s1841_s12 + $0x1d0] sm:$0xff] %v342_v58  ;;  %345 = vst [vmem:[%s1841_s12 + $0x1d8] sm:$0xff] %v344_v59  ;;  %v346_v60 = vld [vmem:[%s1833_s11 + $0x780] sm:$0xff]  ;;  %v348_v61 = vld [vmem:[%s1833_s11 + $0x788] sm:$0xff] }
  0x30   : > { %v350_v62 = vld [vmem:[%s1833_s11 + $0x7c0] sm:$0xff]  ;;  %347 = vst [vmem:[%s1841_s12 + $0x1e0] sm:$0xff] %v346_v60  ;;  %349 = vst [vmem:[%s1841_s12 + $0x1e8] sm:$0xff] %v348_v61  ;;  %v352_v63 = vld [vmem:[%s1833_s11 + $0x7c8] sm:$0xff] }
  0x31   : > { %351 = vst [vmem:[%s1841_s12 + $0x1f0] sm:$0xff] %v350_v62  ;;  %v354_v0 = vld [vmem:[%s1833_s11 + $0x800] sm:$0xff]  ;;  %v356_v1 = vld [vmem:[%s1833_s11 + $0x808] sm:$0xff]  ;;  %353 = vst [vmem:[%s1841_s12 + $0x1f8] sm:$0xff] %v352_v63 }
  0x32   : > { %355 = vst [vmem:[%s1841_s12 + $0x200] sm:$0xff] %v354_v0  ;;  %357 = vst [vmem:[%s1841_s12 + $0x208] sm:$0xff] %v356_v1  ;;  %v358_v2 = vld [vmem:[%s1833_s11 + $0x840] sm:$0xff]  ;;  %v360_v3 = vld [vmem:[%s1833_s11 + $0x848] sm:$0xff] }
  0x33   : > { %v362_v4 = vld [vmem:[%s1833_s11 + $0x880] sm:$0xff]  ;;  %359 = vst [vmem:[%s1841_s12 + $0x210] sm:$0xff] %v358_v2  ;;  %361 = vst [vmem:[%s1841_s12 + $0x218] sm:$0xff] %v360_v3  ;;  %v364_v5 = vld [vmem:[%s1833_s11 + $0x888] sm:$0xff] }
  0x34   : > { %363 = vst [vmem:[%s1841_s12 + $0x220] sm:$0xff] %v362_v4  ;;  %v366_v6 = vld [vmem:[%s1833_s11 + $0x8c0] sm:$0xff]  ;;  %v368_v7 = vld [vmem:[%s1833_s11 + $0x8c8] sm:$0xff]  ;;  %365 = vst [vmem:[%s1841_s12 + $0x228] sm:$0xff] %v364_v5 }
  0x35   : > { %367 = vst [vmem:[%s1841_s12 + $0x230] sm:$0xff] %v366_v6  ;;  %369 = vst [vmem:[%s1841_s12 + $0x238] sm:$0xff] %v368_v7  ;;  %v370_v8 = vld [vmem:[%s1833_s11 + $0x900] sm:$0xff]  ;;  %v372_v9 = vld [vmem:[%s1833_s11 + $0x908] sm:$0xff] }
  0x36   : > { %v374_v10 = vld [vmem:[%s1833_s11 + $0x940] sm:$0xff]  ;;  %371 = vst [vmem:[%s1841_s12 + $0x240] sm:$0xff] %v370_v8  ;;  %373 = vst [vmem:[%s1841_s12 + $0x248] sm:$0xff] %v372_v9  ;;  %v376_v11 = vld [vmem:[%s1833_s11 + $0x948] sm:$0xff] }
  0x37   : > { %375 = vst [vmem:[%s1841_s12 + $0x250] sm:$0xff] %v374_v10  ;;  %v378_v12 = vld [vmem:[%s1833_s11 + $0x980] sm:$0xff]  ;;  %v380_v13 = vld [vmem:[%s1833_s11 + $0x988] sm:$0xff]  ;;  %377 = vst [vmem:[%s1841_s12 + $0x258] sm:$0xff] %v376_v11 }
  0x38   : > { %379 = vst [vmem:[%s1841_s12 + $0x260] sm:$0xff] %v378_v12  ;;  %381 = vst [vmem:[%s1841_s12 + $0x268] sm:$0xff] %v380_v13  ;;  %v382_v14 = vld [vmem:[%s1833_s11 + $0x9c0] sm:$0xff]  ;;  %v384_v15 = vld [vmem:[%s1833_s11 + $0x9c8] sm:$0xff] }
  0x39   : > { %v386_v16 = vld [vmem:[%s1833_s11 + $0xa00] sm:$0xff]  ;;  %383 = vst [vmem:[%s1841_s12 + $0x270] sm:$0xff] %v382_v14  ;;  %385 = vst [vmem:[%s1841_s12 + $0x278] sm:$0xff] %v384_v15  ;;  %v388_v17 = vld [vmem:[%s1833_s11 + $0xa08] sm:$0xff] }
  0x3a   : > { %387 = vst [vmem:[%s1841_s12 + $0x280] sm:$0xff] %v386_v16  ;;  %v390_v18 = vld [vmem:[%s1833_s11 + $0xa40] sm:$0xff]  ;;  %v392_v19 = vld [vmem:[%s1833_s11 + $0xa48] sm:$0xff]  ;;  %389 = vst [vmem:[%s1841_s12 + $0x288] sm:$0xff] %v388_v17 }
  0x3b   : > { %391 = vst [vmem:[%s1841_s12 + $0x290] sm:$0xff] %v390_v18  ;;  %393 = vst [vmem:[%s1841_s12 + $0x298] sm:$0xff] %v392_v19  ;;  %v394_v20 = vld [vmem:[%s1833_s11 + $0xa80] sm:$0xff]  ;;  %v396_v21 = vld [vmem:[%s1833_s11 + $0xa88] sm:$0xff] }
  0x3c   : > { %v398_v22 = vld [vmem:[%s1833_s11 + $0xac0] sm:$0xff]  ;;  %395 = vst [vmem:[%s1841_s12 + $0x2a0] sm:$0xff] %v394_v20  ;;  %397 = vst [vmem:[%s1841_s12 + $0x2a8] sm:$0xff] %v396_v21  ;;  %v400_v23 = vld [vmem:[%s1833_s11 + $0xac8] sm:$0xff] }
  0x3d   : > { %399 = vst [vmem:[%s1841_s12 + $0x2b0] sm:$0xff] %v398_v22  ;;  %v402_v24 = vld [vmem:[%s1833_s11 + $0xb00] sm:$0xff]  ;;  %v404_v25 = vld [vmem:[%s1833_s11 + $0xb08] sm:$0xff]  ;;  %401 = vst [vmem:[%s1841_s12 + $0x2b8] sm:$0xff] %v400_v23 }
  0x3e   : > { %403 = vst [vmem:[%s1841_s12 + $0x2c0] sm:$0xff] %v402_v24  ;;  %405 = vst [vmem:[%s1841_s12 + $0x2c8] sm:$0xff] %v404_v25  ;;  %v406_v26 = vld [vmem:[%s1833_s11 + $0xb40] sm:$0xff]  ;;  %v408_v27 = vld [vmem:[%s1833_s11 + $0xb48] sm:$0xff] }
  0x3f   : > { %v410_v28 = vld [vmem:[%s1833_s11 + $0xb80] sm:$0xff]  ;;  %407 = vst [vmem:[%s1841_s12 + $0x2d0] sm:$0xff] %v406_v26  ;;  %409 = vst [vmem:[%s1841_s12 + $0x2d8] sm:$0xff] %v408_v27  ;;  %v412_v29 = vld [vmem:[%s1833_s11 + $0xb88] sm:$0xff] }
  0x40   : > { %411 = vst [vmem:[%s1841_s12 + $0x2e0] sm:$0xff] %v410_v28  ;;  %v414_v30 = vld [vmem:[%s1833_s11 + $0xbc0] sm:$0xff]  ;;  %v416_v31 = vld [vmem:[%s1833_s11 + $0xbc8] sm:$0xff]  ;;  %413 = vst [vmem:[%s1841_s12 + $0x2e8] sm:$0xff] %v412_v29 }
  0x41   : > { %415 = vst [vmem:[%s1841_s12 + $0x2f0] sm:$0xff] %v414_v30  ;;  %417 = vst [vmem:[%s1841_s12 + $0x2f8] sm:$0xff] %v416_v31  ;;  %v418_v32 = vld [vmem:[%s1833_s11 + $0xc00] sm:$0xff]  ;;  %v420_v33 = vld [vmem:[%s1833_s11 + $0xc08] sm:$0xff] }
  0x42   : > { %v422_v34 = vld [vmem:[%s1833_s11 + $0xc40] sm:$0xff]  ;;  %419 = vst [vmem:[%s1841_s12 + $0x300] sm:$0xff] %v418_v32  ;;  %421 = vst [vmem:[%s1841_s12 + $0x308] sm:$0xff] %v420_v33  ;;  %v424_v35 = vld [vmem:[%s1833_s11 + $0xc48] sm:$0xff] }
  0x43   : > { %423 = vst [vmem:[%s1841_s12 + $0x310] sm:$0xff] %v422_v34  ;;  %v426_v36 = vld [vmem:[%s1833_s11 + $0xc80] sm:$0xff]  ;;  %v428_v37 = vld [vmem:[%s1833_s11 + $0xc88] sm:$0xff]  ;;  %425 = vst [vmem:[%s1841_s12 + $0x318] sm:$0xff] %v424_v35 }
  0x44   : > { %427 = vst [vmem:[%s1841_s12 + $0x320] sm:$0xff] %v426_v36  ;;  %429 = vst [vmem:[%s1841_s12 + $0x328] sm:$0xff] %v428_v37  ;;  %v430_v38 = vld [vmem:[%s1833_s11 + $0xcc0] sm:$0xff]  ;;  %v432_v39 = vld [vmem:[%s1833_s11 + $0xcc8] sm:$0xff] }
  0x45   : > { %v434_v40 = vld [vmem:[%s1833_s11 + $0xd00] sm:$0xff]  ;;  %431 = vst [vmem:[%s1841_s12 + $0x330] sm:$0xff] %v430_v38  ;;  %433 = vst [vmem:[%s1841_s12 + $0x338] sm:$0xff] %v432_v39  ;;  %v436_v41 = vld [vmem:[%s1833_s11 + $0xd08] sm:$0xff] }
  0x46   : > { %435 = vst [vmem:[%s1841_s12 + $0x340] sm:$0xff] %v434_v40  ;;  %v438_v42 = vld [vmem:[%s1833_s11 + $0xd40] sm:$0xff]  ;;  %v440_v43 = vld [vmem:[%s1833_s11 + $0xd48] sm:$0xff]  ;;  %437 = vst [vmem:[%s1841_s12 + $0x348] sm:$0xff] %v436_v41 }
  0x47   : > { %439 = vst [vmem:[%s1841_s12 + $0x350] sm:$0xff] %v438_v42  ;;  %441 = vst [vmem:[%s1841_s12 + $0x358] sm:$0xff] %v440_v43  ;;  %v442_v44 = vld [vmem:[%s1833_s11 + $0xd80] sm:$0xff]  ;;  %v444_v45 = vld [vmem:[%s1833_s11 + $0xd88] sm:$0xff] }
  0x48   : > { %v446_v46 = vld [vmem:[%s1833_s11 + $0xdc0] sm:$0xff]  ;;  %443 = vst [vmem:[%s1841_s12 + $0x360] sm:$0xff] %v442_v44  ;;  %445 = vst [vmem:[%s1841_s12 + $0x368] sm:$0xff] %v444_v45  ;;  %v448_v47 = vld [vmem:[%s1833_s11 + $0xdc8] sm:$0xff] }
  0x49   : > { %447 = vst [vmem:[%s1841_s12 + $0x370] sm:$0xff] %v446_v46  ;;  %v450_v48 = vld [vmem:[%s1833_s11 + $0xe00] sm:$0xff]  ;;  %v452_v49 = vld [vmem:[%s1833_s11 + $0xe08] sm:$0xff]  ;;  %449 = vst [vmem:[%s1841_s12 + $0x378] sm:$0xff] %v448_v47 }
  0x4a   : > { %451 = vst [vmem:[%s1841_s12 + $0x380] sm:$0xff] %v450_v48  ;;  %453 = vst [vmem:[%s1841_s12 + $0x388] sm:$0xff] %v452_v49  ;;  %v454_v50 = vld [vmem:[%s1833_s11 + $0xe40] sm:$0xff]  ;;  %v456_v51 = vld [vmem:[%s1833_s11 + $0xe48] sm:$0xff] }
  0x4b   : > { %v458_v52 = vld [vmem:[%s1833_s11 + $0xe80] sm:$0xff]  ;;  %455 = vst [vmem:[%s1841_s12 + $0x390] sm:$0xff] %v454_v50  ;;  %457 = vst [vmem:[%s1841_s12 + $0x398] sm:$0xff] %v456_v51  ;;  %v460_v53 = vld [vmem:[%s1833_s11 + $0xe88] sm:$0xff] }
  0x4c   : > { %459 = vst [vmem:[%s1841_s12 + $0x3a0] sm:$0xff] %v458_v52  ;;  %v462_v54 = vld [vmem:[%s1833_s11 + $0xec0] sm:$0xff]  ;;  %v464_v55 = vld [vmem:[%s1833_s11 + $0xec8] sm:$0xff]  ;;  %461 = vst [vmem:[%s1841_s12 + $0x3a8] sm:$0xff] %v460_v53 }
  0x4d   : > { %463 = vst [vmem:[%s1841_s12 + $0x3b0] sm:$0xff] %v462_v54  ;;  %465 = vst [vmem:[%s1841_s12 + $0x3b8] sm:$0xff] %v464_v55  ;;  %v466_v56 = vld [vmem:[%s1833_s11 + $0xf00] sm:$0xff]  ;;  %v468_v57 = vld [vmem:[%s1833_s11 + $0xf08] sm:$0xff] }
  0x4e   : > { %v470_v58 = vld [vmem:[%s1833_s11 + $0xf40] sm:$0xff]  ;;  %467 = vst [vmem:[%s1841_s12 + $0x3c0] sm:$0xff] %v466_v56  ;;  %469 = vst [vmem:[%s1841_s12 + $0x3c8] sm:$0xff] %v468_v57  ;;  %v472_v59 = vld [vmem:[%s1833_s11 + $0xf48] sm:$0xff] }
  0x4f   : > { %471 = vst [vmem:[%s1841_s12 + $0x3d0] sm:$0xff] %v470_v58  ;;  %v474_v60 = vld [vmem:[%s1833_s11 + $0xf80] sm:$0xff]  ;;  %v476_v61 = vld [vmem:[%s1833_s11 + $0xf88] sm:$0xff]  ;;  %473 = vst [vmem:[%s1841_s12 + $0x3d8] sm:$0xff] %v472_v59 }
  0x50   : > { %475 = vst [vmem:[%s1841_s12 + $0x3e0] sm:$0xff] %v474_v60  ;;  %477 = vst [vmem:[%s1841_s12 + $0x3e8] sm:$0xff] %v476_v61  ;;  %v478_v62 = vld [vmem:[%s1833_s11 + $0xfc0] sm:$0xff]  ;;  %v480_v63 = vld [vmem:[%s1833_s11 + $0xfc8] sm:$0xff] }
  0x51   : > { %v482_v0 = vld [vmem:[%s1833_s11 + $0x1000] sm:$0xff]  ;;  %479 = vst [vmem:[%s1841_s12 + $0x3f0] sm:$0xff] %v478_v62  ;;  %481 = vst [vmem:[%s1841_s12 + $0x3f8] sm:$0xff] %v480_v63  ;;  %v484_v1 = vld [vmem:[%s1833_s11 + $0x1008] sm:$0xff] }
  0x52   : > { %483 = vst [vmem:[%s1841_s12 + $0x400] sm:$0xff] %v482_v0  ;;  %v486_v2 = vld [vmem:[%s1833_s11 + $0x1040] sm:$0xff]  ;;  %v488_v3 = vld [vmem:[%s1833_s11 + $0x1048] sm:$0xff]  ;;  %485 = vst [vmem:[%s1841_s12 + $0x408] sm:$0xff] %v484_v1 }
  0x53   : > { %487 = vst [vmem:[%s1841_s12 + $0x410] sm:$0xff] %v486_v2  ;;  %489 = vst [vmem:[%s1841_s12 + $0x418] sm:$0xff] %v488_v3  ;;  %v490_v4 = vld [vmem:[%s1833_s11 + $0x1080] sm:$0xff]  ;;  %v492_v5 = vld [vmem:[%s1833_s11 + $0x1088] sm:$0xff] }
  0x54   : > { %v494_v6 = vld [vmem:[%s1833_s11 + $0x10c0] sm:$0xff]  ;;  %491 = vst [vmem:[%s1841_s12 + $0x420] sm:$0xff] %v490_v4  ;;  %493 = vst [vmem:[%s1841_s12 + $0x428] sm:$0xff] %v492_v5  ;;  %v496_v7 = vld [vmem:[%s1833_s11 + $0x10c8] sm:$0xff] }
  0x55   : > { %495 = vst [vmem:[%s1841_s12 + $0x430] sm:$0xff] %v494_v6  ;;  %v498_v8 = vld [vmem:[%s1833_s11 + $0x1100] sm:$0xff]  ;;  %v500_v9 = vld [vmem:[%s1833_s11 + $0x1108] sm:$0xff]  ;;  %497 = vst [vmem:[%s1841_s12 + $0x438] sm:$0xff] %v496_v7 }
  0x56   : > { %499 = vst [vmem:[%s1841_s12 + $0x440] sm:$0xff] %v498_v8  ;;  %501 = vst [vmem:[%s1841_s12 + $0x448] sm:$0xff] %v500_v9  ;;  %v502_v10 = vld [vmem:[%s1833_s11 + $0x1140] sm:$0xff]  ;;  %v504_v11 = vld [vmem:[%s1833_s11 + $0x1148] sm:$0xff] }
  0x57   : > { %v506_v12 = vld [vmem:[%s1833_s11 + $0x1180] sm:$0xff]  ;;  %503 = vst [vmem:[%s1841_s12 + $0x450] sm:$0xff] %v502_v10  ;;  %505 = vst [vmem:[%s1841_s12 + $0x458] sm:$0xff] %v504_v11  ;;  %v508_v13 = vld [vmem:[%s1833_s11 + $0x1188] sm:$0xff] }
  0x58   : > { %507 = vst [vmem:[%s1841_s12 + $0x460] sm:$0xff] %v506_v12  ;;  %v510_v14 = vld [vmem:[%s1833_s11 + $0x11c0] sm:$0xff]  ;;  %v512_v15 = vld [vmem:[%s1833_s11 + $0x11c8] sm:$0xff]  ;;  %509 = vst [vmem:[%s1841_s12 + $0x468] sm:$0xff] %v508_v13 }
  0x59   : > { %511 = vst [vmem:[%s1841_s12 + $0x470] sm:$0xff] %v510_v14  ;;  %513 = vst [vmem:[%s1841_s12 + $0x478] sm:$0xff] %v512_v15  ;;  %v514_v16 = vld [vmem:[%s1833_s11 + $0x1200] sm:$0xff]  ;;  %v516_v17 = vld [vmem:[%s1833_s11 + $0x1208] sm:$0xff] }
  0x5a   : > { %v518_v18 = vld [vmem:[%s1833_s11 + $0x1240] sm:$0xff]  ;;  %515 = vst [vmem:[%s1841_s12 + $0x480] sm:$0xff] %v514_v16  ;;  %517 = vst [vmem:[%s1841_s12 + $0x488] sm:$0xff] %v516_v17  ;;  %v520_v19 = vld [vmem:[%s1833_s11 + $0x1248] sm:$0xff] }
  0x5b   : > { %519 = vst [vmem:[%s1841_s12 + $0x490] sm:$0xff] %v518_v18  ;;  %v522_v20 = vld [vmem:[%s1833_s11 + $0x1280] sm:$0xff]  ;;  %v524_v21 = vld [vmem:[%s1833_s11 + $0x1288] sm:$0xff]  ;;  %521 = vst [vmem:[%s1841_s12 + $0x498] sm:$0xff] %v520_v19 }
  0x5c   : > { %523 = vst [vmem:[%s1841_s12 + $0x4a0] sm:$0xff] %v522_v20  ;;  %525 = vst [vmem:[%s1841_s12 + $0x4a8] sm:$0xff] %v524_v21  ;;  %v526_v22 = vld [vmem:[%s1833_s11 + $0x12c0] sm:$0xff]  ;;  %v528_v23 = vld [vmem:[%s1833_s11 + $0x12c8] sm:$0xff] }
  0x5d   : > { %v530_v24 = vld [vmem:[%s1833_s11 + $0x1300] sm:$0xff]  ;;  %527 = vst [vmem:[%s1841_s12 + $0x4b0] sm:$0xff] %v526_v22  ;;  %529 = vst [vmem:[%s1841_s12 + $0x4b8] sm:$0xff] %v528_v23  ;;  %v532_v25 = vld [vmem:[%s1833_s11 + $0x1308] sm:$0xff] }
  0x5e   : > { %531 = vst [vmem:[%s1841_s12 + $0x4c0] sm:$0xff] %v530_v24  ;;  %v534_v26 = vld [vmem:[%s1833_s11 + $0x1340] sm:$0xff]  ;;  %v536_v27 = vld [vmem:[%s1833_s11 + $0x1348] sm:$0xff]  ;;  %533 = vst [vmem:[%s1841_s12 + $0x4c8] sm:$0xff] %v532_v25 }
  0x5f   : > { %535 = vst [vmem:[%s1841_s12 + $0x4d0] sm:$0xff] %v534_v26  ;;  %537 = vst [vmem:[%s1841_s12 + $0x4d8] sm:$0xff] %v536_v27  ;;  %v538_v28 = vld [vmem:[%s1833_s11 + $0x1380] sm:$0xff]  ;;  %v540_v29 = vld [vmem:[%s1833_s11 + $0x1388] sm:$0xff] }
  0x60   : > { %v542_v30 = vld [vmem:[%s1833_s11 + $0x13c0] sm:$0xff]  ;;  %539 = vst [vmem:[%s1841_s12 + $0x4e0] sm:$0xff] %v538_v28  ;;  %541 = vst [vmem:[%s1841_s12 + $0x4e8] sm:$0xff] %v540_v29  ;;  %v544_v31 = vld [vmem:[%s1833_s11 + $0x13c8] sm:$0xff] }
  0x61   : > { %543 = vst [vmem:[%s1841_s12 + $0x4f0] sm:$0xff] %v542_v30  ;;  %v546_v32 = vld [vmem:[%s1833_s11 + $0x1400] sm:$0xff]  ;;  %v548_v33 = vld [vmem:[%s1833_s11 + $0x1408] sm:$0xff]  ;;  %545 = vst [vmem:[%s1841_s12 + $0x4f8] sm:$0xff] %v544_v31 }
  0x62   : > { %547 = vst [vmem:[%s1841_s12 + $0x500] sm:$0xff] %v546_v32  ;;  %549 = vst [vmem:[%s1841_s12 + $0x508] sm:$0xff] %v548_v33  ;;  %v550_v34 = vld [vmem:[%s1833_s11 + $0x1440] sm:$0xff]  ;;  %v552_v35 = vld [vmem:[%s1833_s11 + $0x1448] sm:$0xff] }
  0x63   : > { %v554_v36 = vld [vmem:[%s1833_s11 + $0x1480] sm:$0xff]  ;;  %551 = vst [vmem:[%s1841_s12 + $0x510] sm:$0xff] %v550_v34  ;;  %553 = vst [vmem:[%s1841_s12 + $0x518] sm:$0xff] %v552_v35  ;;  %v556_v37 = vld [vmem:[%s1833_s11 + $0x1488] sm:$0xff] }
  0x64   : > { %555 = vst [vmem:[%s1841_s12 + $0x520] sm:$0xff] %v554_v36  ;;  %v558_v38 = vld [vmem:[%s1833_s11 + $0x14c0] sm:$0xff]  ;;  %v560_v39 = vld [vmem:[%s1833_s11 + $0x14c8] sm:$0xff]  ;;  %557 = vst [vmem:[%s1841_s12 + $0x528] sm:$0xff] %v556_v37 }
  0x65   : > { %559 = vst [vmem:[%s1841_s12 + $0x530] sm:$0xff] %v558_v38  ;;  %561 = vst [vmem:[%s1841_s12 + $0x538] sm:$0xff] %v560_v39  ;;  %v562_v40 = vld [vmem:[%s1833_s11 + $0x1500] sm:$0xff]  ;;  %v564_v41 = vld [vmem:[%s1833_s11 + $0x1508] sm:$0xff] }
  0x66   : > { %v566_v42 = vld [vmem:[%s1833_s11 + $0x1540] sm:$0xff]  ;;  %563 = vst [vmem:[%s1841_s12 + $0x540] sm:$0xff] %v562_v40  ;;  %565 = vst [vmem:[%s1841_s12 + $0x548] sm:$0xff] %v564_v41  ;;  %v568_v43 = vld [vmem:[%s1833_s11 + $0x1548] sm:$0xff] }
  0x67   : > { %567 = vst [vmem:[%s1841_s12 + $0x550] sm:$0xff] %v566_v42  ;;  %v570_v44 = vld [vmem:[%s1833_s11 + $0x1580] sm:$0xff]  ;;  %v572_v45 = vld [vmem:[%s1833_s11 + $0x1588] sm:$0xff]  ;;  %569 = vst [vmem:[%s1841_s12 + $0x558] sm:$0xff] %v568_v43 }
  0x68   : > { %571 = vst [vmem:[%s1841_s12 + $0x560] sm:$0xff] %v570_v44  ;;  %573 = vst [vmem:[%s1841_s12 + $0x568] sm:$0xff] %v572_v45  ;;  %v574_v46 = vld [vmem:[%s1833_s11 + $0x15c0] sm:$0xff]  ;;  %v576_v47 = vld [vmem:[%s1833_s11 + $0x15c8] sm:$0xff] }
  0x69   : > { %v578_v48 = vld [vmem:[%s1833_s11 + $0x1600] sm:$0xff]  ;;  %575 = vst [vmem:[%s1841_s12 + $0x570] sm:$0xff] %v574_v46  ;;  %577 = vst [vmem:[%s1841_s12 + $0x578] sm:$0xff] %v576_v47  ;;  %v580_v49 = vld [vmem:[%s1833_s11 + $0x1608] sm:$0xff] }
  0x6a   : > { %579 = vst [vmem:[%s1841_s12 + $0x580] sm:$0xff] %v578_v48  ;;  %v582_v50 = vld [vmem:[%s1833_s11 + $0x1640] sm:$0xff]  ;;  %v584_v51 = vld [vmem:[%s1833_s11 + $0x1648] sm:$0xff]  ;;  %581 = vst [vmem:[%s1841_s12 + $0x588] sm:$0xff] %v580_v49 }
  0x6b   : > { %583 = vst [vmem:[%s1841_s12 + $0x590] sm:$0xff] %v582_v50  ;;  %585 = vst [vmem:[%s1841_s12 + $0x598] sm:$0xff] %v584_v51  ;;  %v586_v52 = vld [vmem:[%s1833_s11 + $0x1680] sm:$0xff]  ;;  %v588_v53 = vld [vmem:[%s1833_s11 + $0x1688] sm:$0xff] }
  0x6c   : > { %v590_v54 = vld [vmem:[%s1833_s11 + $0x16c0] sm:$0xff]  ;;  %587 = vst [vmem:[%s1841_s12 + $0x5a0] sm:$0xff] %v586_v52  ;;  %589 = vst [vmem:[%s1841_s12 + $0x5a8] sm:$0xff] %v588_v53  ;;  %v592_v55 = vld [vmem:[%s1833_s11 + $0x16c8] sm:$0xff] }
  0x6d   : > { %591 = vst [vmem:[%s1841_s12 + $0x5b0] sm:$0xff] %v590_v54  ;;  %v594_v56 = vld [vmem:[%s1833_s11 + $0x1700] sm:$0xff]  ;;  %v596_v57 = vld [vmem:[%s1833_s11 + $0x1708] sm:$0xff]  ;;  %593 = vst [vmem:[%s1841_s12 + $0x5b8] sm:$0xff] %v592_v55 }
  0x6e   : > { %595 = vst [vmem:[%s1841_s12 + $0x5c0] sm:$0xff] %v594_v56  ;;  %597 = vst [vmem:[%s1841_s12 + $0x5c8] sm:$0xff] %v596_v57  ;;  %v598_v58 = vld [vmem:[%s1833_s11 + $0x1740] sm:$0xff]  ;;  %v600_v59 = vld [vmem:[%s1833_s11 + $0x1748] sm:$0xff] }
  0x6f   : > { %v602_v60 = vld [vmem:[%s1833_s11 + $0x1780] sm:$0xff]  ;;  %599 = vst [vmem:[%s1841_s12 + $0x5d0] sm:$0xff] %v598_v58  ;;  %601 = vst [vmem:[%s1841_s12 + $0x5d8] sm:$0xff] %v600_v59  ;;  %v604_v61 = vld [vmem:[%s1833_s11 + $0x1788] sm:$0xff] }
  0x70   : > { %603 = vst [vmem:[%s1841_s12 + $0x5e0] sm:$0xff] %v602_v60  ;;  %v606_v62 = vld [vmem:[%s1833_s11 + $0x17c0] sm:$0xff]  ;;  %v608_v63 = vld [vmem:[%s1833_s11 + $0x17c8] sm:$0xff]  ;;  %605 = vst [vmem:[%s1841_s12 + $0x5e8] sm:$0xff] %v604_v61 }
  0x71   : > { %607 = vst [vmem:[%s1841_s12 + $0x5f0] sm:$0xff] %v606_v62  ;;  %609 = vst [vmem:[%s1841_s12 + $0x5f8] sm:$0xff] %v608_v63 }
  0x72 PF: > { %632 = sbr.rel (!%p1821_p3) target bundleno = 122 (0x7a), region = 59  ;;  %s634_s13 = sand.u32 (%p1821_p3), 1, %s1748_s22  }
  0x73   : > { %s1436_s14 = sshll.u32 (%p1821_p3), %s1752_s23, 4  ;;  %s1408_s15 = sshll.u32 (%p1821_p3), %s634_s13, 6 }
  0x74   : > { %s639_s18 = scalar_lea.vmem (%p1821_p3), %s2526_s5, %s1436_s14  ;;  %s636_s19 = scalar_lea.vmem (%p1821_p3), [#allocation4], %s1408_s15 }
  0x75   : > { %v652_v0 = vld [vmem:[%s639_s18] sm:$0xff] (%p1821_p3)  ;;  %v654_v1 = vld [vmem:[%s639_s18 + $0x8] sm:$0xff] (%p1821_p3) }
  0x76   : > { %v656_v2 = vld [vmem:[%s639_s18 + $0x40] sm:$0xff] (%p1821_p3)  ;;  %653 = vst [vmem:[%s636_s19] sm:$0xff] (%p1821_p3), %v652_v0  ;;  %655 = vst [vmem:[%s636_s19 + $0x8] sm:$0xff] (%p1821_p3), %v654_v1  ;;  %v658_v3 = vld [vmem:[%s639_s18 + $0x48] sm:$0xff] (%p1821_p3) }
  0x77   : > { %657 = vst [vmem:[%s636_s19 + $0x10] sm:$0xff] (%p1821_p3), %v656_v2  ;;  %v660_v4 = vld [vmem:[%s639_s18 + $0x80] sm:$0xff] (%p1821_p3)  ;;  %v662_v5 = vld [vmem:[%s639_s18 + $0x88] sm:$0xff] (%p1821_p3)  ;;  %659 = vst [vmem:[%s636_s19 + $0x18] sm:$0xff] (%p1821_p3), %v658_v3 }
  0x78   : > { %661 = vst [vmem:[%s636_s19 + $0x20] sm:$0xff] (%p1821_p3), %v660_v4  ;;  %663 = vst [vmem:[%s636_s19 + $0x28] sm:$0xff] (%p1821_p3), %v662_v5  ;;  %v664_v6 = vld [vmem:[%s639_s18 + $0xc0] sm:$0xff] (%p1821_p3)  ;;  %v666_v7 = vld [vmem:[%s639_s18 + $0xc8] sm:$0xff] (%p1821_p3) }
  0x79   : > { %665 = vst [vmem:[%s636_s19 + $0x30] sm:$0xff] %v664_v6  ;;  %667 = vst [vmem:[%s636_s19 + $0x38] sm:$0xff] %v666_v7 }
  0x7a PF: > { %p1411_p5 = scmp.ge.s32.totalorder %s1752_s23, 1  ;;  %p672_p6 = scmp.lt.s32.totalorder %s1752_s23, 5 }
  0x7c   : > { %p673_p7 = pnand %p1411_p5, %p672_p6 }
  0x7d   : > { %s679_s20 = sand.u32 (!%p673_p7), 1, %s1744_s21   ;;  %s1413_s26 = sshll.u32 (!%p673_p7), %s1807_s24, 1 }
  0x7e   : > { %676 = sbr.rel (%p673_p7) target bundleno = 719 (0x2cf), region = 82  ;;  %s1412_s29 = sshll.u32 (!%p673_p7), %s679_s20, 6 }
  0x7f   : > { %s1703_s27 = smul.u32 (!%p673_p7), 1536, %s679_s20  ;;  %p725_p8 = scmp.lt.s32.totalorder (!%p673_p7), %s1413_s26, 7 }
  0x80   : > { %s1414_s30 = sshll.u32 (!%p673_p7), %s1807_s24, 5  ;;  %s2246_s13 = scalar_lea.vmem (!%p673_p7), [#allocation4], %s1412_s29 }
  0x81   : > { %p730_p9 = scmp.lt.s32.totalorder (!%p673_p7), %s1414_s30, 127  ;;  %s2244_s21 = scalar_lea.vmem (!%p673_p7), [#allocation3], %s1703_s27 }
  0x82   : > { %p1416_p10 = scmp.ne.s32.totalorder (!%p673_p7), %s1807_s24, 0 }
  0x85   : > { %s2533_s26 = smov (!%p725_p8, %s1413_s26), 7  ;;  %s2535_s30 = smov (!%p730_p9, %s1414_s30), 127 }
  0x86   : > { %s727_s9 = scalar_lea.vmem %s2523_s2, %s2533_s26  ;;  %s1415_s23 = sshll.u32 %s2535_s30, 3  ;;  %vm740_vm0 = vcmask (!%p1416_p10), 23552   ;;  %v1754_v8 = vmov (!%p1416_p10), 0.0  }
  0x87   : > { %s2242_s12 = scalar_lea.vmem %s2524_s3, %s1415_s23  ;;  %739 = sbr.rel (%p1416_p10) target bundleno = 142 (0x8e), region = 94  ;;  %741 = vst.msk [vmem:[#allocation2] sm:$0xff] (!%p1416_p10), %vm740_vm0, %v1754_v8 }
  0x8e PF: > { %v813_v9 = vld [vmem:[%s2244_s21 + $0x208] sm:$0xff]  ;;  %v815_v10 = vld [vmem:[%s2244_s21 + $0x218] sm:$0xff]  ;;  %v812_v11 = vld [vmem:[%s2244_s21 + $0x200] sm:$0xff]  ;;  %vm1314_vm9 = vcmask 23552   ;;  %p1431_p11 = scmp.ne.s32.totalorder %s1807_s24, 3 }
  0x8f   : > { %v1536_v12 = vpack.c.bf16 %v815_v10, %v813_v9  ;;  %v814_v13 = vld [vmem:[%s2244_s21 + $0x210] sm:$0xff]  ;;  %v817_v14 = vld [vmem:[%s2244_s21 + $0x228] sm:$0xff]  ;;  %v819_v15 = vld [vmem:[%s2244_s21 + $0x238] sm:$0xff] }
  0x90   : > { %v1538_v16 = vpack.c.bf16 %v814_v13, %v812_v11  ;;  %v1540_v17 = vpack.c.bf16 %v819_v15, %v817_v14  ;;  %v816_v18 = vld [vmem:[%s2244_s21 + $0x220] sm:$0xff]  ;;  %v818_v19 = vld [vmem:[%s2244_s21 + $0x230] sm:$0xff]  ;;  %v821_v20 = vld [vmem:[%s2244_s21 + $0x248] sm:$0xff] }
  0x91   : > { %1537 = vmatprep.subr.bf16.mxu0 %v1536_v12  ;;  %v823_v21 = vld [vmem:[%s2244_s21 + $0x258] sm:$0xff]  ;;  %v1542_v22 = vpack.c.bf16 %v818_v19, %v816_v18  ;;  %v820_v24 = vld [vmem:[%s2244_s21 + $0x240] sm:$0xff]  ;;  %v822_v25 = vld [vmem:[%s2244_s21 + $0x250] sm:$0xff] }
  0x92   : > { %1539 = vmatpush1.bf16.msra.mxu0 %v1538_v16  ;;  %v1544_v23 = vpack.c.bf16 %v823_v21, %v821_v20  ;;  %v825_v26 = vld [vmem:[%s2244_s21 + $0x268] sm:$0xff]  ;;  %v827_v27 = vld [vmem:[%s2244_s21 + $0x278] sm:$0xff]  ;;  %v1546_v28 = vpack.c.bf16 %v822_v25, %v820_v24  ;;  %v824_v30 = vld [vmem:[%s2244_s21 + $0x260] sm:$0xff] }
  0x93   : > { %1541 = vmatprep.subr.bf16.mxu0 %v1540_v17  ;;  %v1548_v29 = vpack.c.bf16 %v827_v27, %v825_v26  ;;  %v826_v31 = vld [vmem:[%s2244_s21 + $0x270] sm:$0xff]  ;;  %v829_v32 = vld [vmem:[%s2244_s21 + $0x288] sm:$0xff]  ;;  %v831_v33 = vld [vmem:[%s2244_s21 + $0x298] sm:$0xff] }
  0x94   : > { %v1550_v34 = vpack.c.bf16 %v826_v31, %v824_v30  ;;  %v1552_v35 = vpack.c.bf16 %v831_v33, %v829_v32  ;;  %v828_v36 = vld [vmem:[%s2244_s21 + $0x280] sm:$0xff]  ;;  %v830_v37 = vld [vmem:[%s2244_s21 + $0x290] sm:$0xff]  ;;  %v833_v38 = vld [vmem:[%s2244_s21 + $0x2a8] sm:$0xff] }
  0x95   : > { %v835_v39 = vld [vmem:[%s2244_s21 + $0x2b8] sm:$0xff]  ;;  %v1554_v40 = vpack.c.bf16 %v830_v37, %v828_v36  ;;  %v832_v42 = vld [vmem:[%s2244_s21 + $0x2a0] sm:$0xff]  ;;  %v834_v43 = vld [vmem:[%s2244_s21 + $0x2b0] sm:$0xff] }
  0x96   : > { %1543 = vmatpush1.bf16.msra.mxu0 %v1542_v22  ;;  %v1556_v41 = vpack.c.bf16 %v835_v39, %v833_v38  ;;  %v837_v44 = vld [vmem:[%s2244_s21 + $0x2c8] sm:$0xff]  ;;  %v839_v45 = vld [vmem:[%s2244_s21 + $0x2d8] sm:$0xff]  ;;  %v1558_v46 = vpack.c.bf16 %v834_v43, %v832_v42  ;;  %v836_v47 = vld [vmem:[%s2244_s21 + $0x2c0] sm:$0xff] }
  0x97   : > { %1545 = vmatprep.subr.bf16.mxu0 %v1544_v23  ;;  %v838_v48 = vld [vmem:[%s2244_s21 + $0x2d0] sm:$0xff]  ;;  %v749_v49 = vld [vmem:[%s2244_s21 + $0x8] sm:$0xff]  ;;  %v1560_v50 = vpack.c.bf16 %v839_v45, %v837_v44  ;;  %v843_v52 = vld [vmem:[%s2244_s21 + $0x2f8] sm:$0xff] }
  0x98   : > { %v841_v51 = vld [vmem:[%s2244_s21 + $0x2e8] sm:$0xff]  ;;  %v751_v53 = vld [vmem:[%s2244_s21 + $0x18] sm:$0xff]  ;;  %v748_v55 = vld [vmem:[%s2244_s21] sm:$0xff]  ;;  %v1562_v60 = vpack.c.bf16 %v838_v48, %v836_v47 }
  0x99   : > { %v1472_v54 = vpack.c.bf16 %v751_v53, %v749_v49  ;;  %v750_v56 = vld [vmem:[%s2244_s21 + $0x10] sm:$0xff]  ;;  %v753_v59 = vld [vmem:[%s2244_s21 + $0x28] sm:$0xff]  ;;  %v840_v61 = vld [vmem:[%s2244_s21 + $0x2e0] sm:$0xff]  ;;  %v1564_v63 = vpack.c.bf16 %v843_v52, %v841_v51 }
  0x9a   : > { %1547 = vmatpush1.bf16.msra.mxu0 %v1546_v28  ;;  %v745_v57 = vld [vmem:[%s2521_s0 + $0x18] sm:$0xff]  ;;  %v1474_v58 = vpack.c.bf16 %v750_v56, %v748_v55  ;;  %v755_v62 = vld [vmem:[%s2244_s21 + $0x38] sm:$0xff]  ;;  %v752_v2 = vld [vmem:[%s2244_s21 + $0x20] sm:$0xff] }
  0x9b   : > { %1549 = vmatprep.subr.bf16.mxu0 %v1548_v29  ;;  %1087 = vmatprep.mubr.f32.mxu0 %v745_v57  ;;  %v842_v0 = vld [vmem:[%s2244_s21 + $0x2f0] sm:$0xff]  ;;  %v1476_v1 = vpack.c.bf16 %v755_v62, %v753_v59  ;;  %v845_v4 = vld [vmem:[%s2244_s21 + $0x308] sm:$0xff]  ;;  %v847_v5 = vld [vmem:[%s2244_s21 + $0x318] sm:$0xff] }
  0x9c   : > { %1473 = vmatprep.subr.bf16.mxu1 %v1472_v54  ;;  %v754_v3 = vld [vmem:[%s2244_s21 + $0x30] sm:$0xff]  ;;  %v757_v7 = vld [vmem:[%s2244_s21 + $0x48] sm:$0xff]  ;;  %v759_v8 = vld [vmem:[%s2244_s21 + $0x58] sm:$0xff]  ;;  %v1566_v9 = vpack.c.bf16 %v842_v0, %v840_v61  ;;  %v1568_v14 = vpack.c.bf16 %v847_v5, %v845_v4 }
  0x9d   : > { %1475 = vmatpush1.bf16.msra.mxu1 %v1474_v58  ;;  %v1478_v6 = vpack.c.bf16 %v754_v3, %v752_v2  ;;  %v844_v10 = vld [vmem:[%s2244_s21 + $0x300] sm:$0xff]  ;;  %v1480_v11 = vpack.c.bf16 %v759_v8, %v757_v7  ;;  %v758_v13 = vld [vmem:[%s2244_s21 + $0x50] sm:$0xff]  ;;  %v761_v17 = vld [vmem:[%s2244_s21 + $0x68] sm:$0xff] }
  0x9e   : > { %1551 = vmatpush1.bf16.msra.mxu0 %v1550_v34  ;;  %1477 = vmatprep.subr.bf16.mxu1 %v1476_v1  ;;  %v756_v12 = vld [vmem:[%s2244_s21 + $0x40] sm:$0xff]  ;;  %v846_v15 = vld [vmem:[%s2244_s21 + $0x310] sm:$0xff]  ;;  %v763_v18 = vld [vmem:[%s2244_s21 + $0x78] sm:$0xff] }
  0x9f   : > { %1553 = vmatprep.subr.bf16.mxu0 %v1552_v35  ;;  %v1482_v16 = vpack.c.bf16 %v758_v13, %v756_v12  ;;  %v849_v19 = vld [vmem:[%s2244_s21 + $0x328] sm:$0xff]  ;;  %v851_v20 = vld [vmem:[%s2244_s21 + $0x338] sm:$0xff]  ;;  %v1484_v21 = vpack.c.bf16 %v763_v18, %v761_v17  ;;  %v760_v22 = vld [vmem:[%s2244_s21 + $0x60] sm:$0xff]  ;;  %v1570_v24 = vpack.c.bf16 %v846_v15, %v844_v10 }
  0xa0   : > { %v762_v23 = vld [vmem:[%s2244_s21 + $0x70] sm:$0xff]  ;;  %v765_v25 = vld [vmem:[%s2244_s21 + $0x88] sm:$0xff]  ;;  %v767_v26 = vld [vmem:[%s2244_s21 + $0x98] sm:$0xff]  ;;  %v1572_v27 = vpack.c.bf16 %v851_v20, %v849_v19 }
  0xa1   : > { %1479 = vmatpush1.bf16.msra.mxu1 %v1478_v6  ;;  %v848_v28 = vld [vmem:[%s2244_s21 + $0x320] sm:$0xff]  ;;  %v850_v29 = vld [vmem:[%s2244_s21 + $0x330] sm:$0xff]  ;;  %v853_v30 = vld [vmem:[%s2244_s21 + $0x348] sm:$0xff]  ;;  %v1486_v31 = vpack.c.bf16 %v762_v23, %v760_v22  ;;  %v1488_v33 = vpack.c.bf16 %v767_v26, %v765_v25 }
  0xa2   : > { %1555 = vmatpush1.bf16.msra.mxu0 %v1554_v40  ;;  %1481 = vmatprep.subr.bf16.mxu1 %v1480_v11  ;;  %v855_v32 = vld [vmem:[%s2244_s21 + $0x358] sm:$0xff]  ;;  %v764_v34 = vld [vmem:[%s2244_s21 + $0x80] sm:$0xff]  ;;  %v766_v35 = vld [vmem:[%s2244_s21 + $0x90] sm:$0xff]  ;;  %v1574_v38 = vpack.c.bf16 %v850_v29, %v848_v28 }
  0xa3   : > { %1557 = vmatprep.subr.bf16.mxu0 %v1556_v41  ;;  %v769_v36 = vld [vmem:[%s2244_s21 + $0xa8] sm:$0xff]  ;;  %v771_v37 = vld [vmem:[%s2244_s21 + $0xb8] sm:$0xff]  ;;  %v1576_v39 = vpack.c.bf16 %v855_v32, %v853_v30  ;;  %v852_v40 = vld [vmem:[%s2244_s21 + $0x340] sm:$0xff]  ;;  %v1490_v43 = vpack.c.bf16 %v766_v35, %v764_v34 }
  0xa4   : > { %v854_v41 = vld [vmem:[%s2244_s21 + $0x350] sm:$0xff]  ;;  %v857_v42 = vld [vmem:[%s2244_s21 + $0x368] sm:$0xff]  ;;  %v859_v44 = vld [vmem:[%s2244_s21 + $0x378] sm:$0xff]  ;;  %v1492_v45 = vpack.c.bf16 %v771_v37, %v769_v36 }
  0xa5   : > { %1483 = vmatpush1.bf16.msra.mxu1 %v1482_v16  ;;  %v770_v47 = vld [vmem:[%s2244_s21 + $0xb0] sm:$0xff]  ;;  %v773_v48 = vld [vmem:[%s2244_s21 + $0xc8] sm:$0xff]  ;;  %v775_v49 = vld [vmem:[%s2244_s21 + $0xd8] sm:$0xff]  ;;  %v1580_v51 = vpack.c.bf16 %v859_v44, %v857_v42 }
  0xa6   : > { %1559 = vmatpush1.bf16.msra.mxu0 %v1558_v46  ;;  %1485 = vmatprep.subr.bf16.mxu1 %v1484_v21  ;;  %v768_v46 = vld [vmem:[%s2244_s21 + $0xa0] sm:$0xff]  ;;  %v858_v53 = vld [vmem:[%s2244_s21 + $0x370] sm:$0xff]  ;;  %v861_v54 = vld [vmem:[%s2244_s21 + $0x388] sm:$0xff]  ;;  %v1496_v57 = vpack.c.bf16 %v775_v49, %v773_v48 }
  0xa7   : > { %1561 = vmatprep.subr.bf16.mxu0 %v1560_v50  ;;  %v1578_v50 = vpack.c.bf16 %v854_v41, %v852_v40  ;;  %v856_v52 = vld [vmem:[%s2244_s21 + $0x360] sm:$0xff]  ;;  %v1494_v55 = vpack.c.bf16 %v770_v47, %v768_v46  ;;  %v863_v56 = vld [vmem:[%s2244_s21 + $0x398] sm:$0xff]  ;;  %v774_v59 = vld [vmem:[%s2244_s21 + $0xd0] sm:$0xff] }
  0xa8   : > { %v772_v58 = vld [vmem:[%s2244_s21 + $0xc0] sm:$0xff]  ;;  %v779_v61 = vld [vmem:[%s2244_s21 + $0xf8] sm:$0xff]  ;;  %v1582_v62 = vpack.c.bf16 %v858_v53, %v856_v52  ;;  %v862_v1 = vld [vmem:[%s2244_s21 + $0x390] sm:$0xff] }
  0xa9   : > { %1487 = vmatpush1.bf16.msra.mxu1 %v1486_v31  ;;  %v860_v0 = vld [vmem:[%s2244_s21 + $0x380] sm:$0xff]  ;;  %v865_v2 = vld [vmem:[%s2244_s21 + $0x3a8] sm:$0xff]  ;;  %v1498_v3 = vpack.c.bf16 %v774_v59, %v772_v58  ;;  %v867_v4 = vld [vmem:[%s2244_s21 + $0x3b8] sm:$0xff] }
  0xaa   : > { %1563 = vmatpush1.bf16.msra.mxu0 %v1562_v60  ;;  %1489 = vmatprep.subr.bf16.mxu1 %v1488_v33  ;;  %v777_v60 = vld [vmem:[%s2244_s21 + $0xe8] sm:$0xff]  ;;  %v776_v6 = vld [vmem:[%s2244_s21 + $0xe0] sm:$0xff]  ;;  %v778_v7 = vld [vmem:[%s2244_s21 + $0xf0] sm:$0xff]  ;;  %v1586_v10 = vpack.c.bf16 %v862_v1, %v860_v0  ;;  %v1588_v11 = vpack.c.bf16 %v867_v4, %v865_v2 }
  0xab   : > { %1565 = vmatprep.subr.bf16.mxu0 %v1564_v63  ;;  %v1584_v63 = vpack.c.bf16 %v863_v56, %v861_v54  ;;  %v1500_v5 = vpack.c.bf16 %v779_v61, %v777_v60  ;;  %v781_v8 = vld [vmem:[%s2244_s21 + $0x108] sm:$0xff]  ;;  %v864_v12 = vld [vmem:[%s2244_s21 + $0x3a0] sm:$0xff]  ;;  %v866_v13 = vld [vmem:[%s2244_s21 + $0x3b0] sm:$0xff]  ;;  %v1502_v15 = vpack.c.bf16 %v778_v7, %v776_v6 }
  0xac   : > { %v871_v16 = vld [vmem:[%s2244_s21 + $0x3d8] sm:$0xff]  ;;  %v780_v18 = vld [vmem:[%s2244_s21 + $0x100] sm:$0xff]  ;;  %v782_v19 = vld [vmem:[%s2244_s21 + $0x110] sm:$0xff]  ;;  %v1590_v22 = vpack.c.bf16 %v866_v13, %v864_v12 }
  0xad   : > { %1491 = vmatpush1.bf16.msra.mxu1 %v1490_v43  ;;  %v785_v20 = vld [vmem:[%s2244_s21 + $0x128] sm:$0xff]  ;;  %v787_v21 = vld [vmem:[%s2244_s21 + $0x138] sm:$0xff]  ;;  %v870_v25 = vld [vmem:[%s2244_s21 + $0x3d0] sm:$0xff] }
  0xae   : > { %1567 = vmatpush1.bf16.msra.mxu0 %v1566_v9  ;;  %1493 = vmatprep.subr.bf16.mxu1 %v1492_v45  ;;  %v783_v9 = vld [vmem:[%s2244_s21 + $0x118] sm:$0xff]  ;;  %v873_v26 = vld [vmem:[%s2244_s21 + $0x3e8] sm:$0xff]  ;;  %v1508_v29 = vpack.c.bf16 %v787_v21, %v785_v20  ;;  %v784_v30 = vld [vmem:[%s2244_s21 + $0x120] sm:$0xff] }
  0xaf   : > { %1569 = vmatprep.subr.bf16.mxu0 %v1568_v14  ;;  %v869_v14 = vld [vmem:[%s2244_s21 + $0x3c8] sm:$0xff]  ;;  %v1504_v17 = vpack.c.bf16 %v783_v9, %v781_v8  ;;  %v875_v28 = vld [vmem:[%s2244_s21 + $0x3f8] sm:$0xff]  ;;  %v786_v31 = vld [vmem:[%s2244_s21 + $0x130] sm:$0xff] }
  0xb0   : > { %v1592_v23 = vpack.c.bf16 %v871_v16, %v869_v14  ;;  %v789_v32 = vld [vmem:[%s2244_s21 + $0x148] sm:$0xff]  ;;  %v791_v33 = vld [vmem:[%s2244_s21 + $0x158] sm:$0xff]  ;;  %v1596_v35 = vpack.c.bf16 %v875_v28, %v873_v26  ;;  %v872_v36 = vld [vmem:[%s2244_s21 + $0x3e0] sm:$0xff] }
  0xb1   : > { %1495 = vmatpush1.bf16.msra.mxu1 %v1494_v55  ;;  %v874_v37 = vld [vmem:[%s2244_s21 + $0x3f0] sm:$0xff]  ;;  %v879_v40 = vld [vmem:[%s2244_s21 + $0x418] sm:$0xff]  ;;  %v1512_v41 = vpack.c.bf16 %v791_v33, %v789_v32  ;;  %v788_v42 = vld [vmem:[%s2244_s21 + $0x140] sm:$0xff] }
  0xb2   : > { %1571 = vmatpush1.bf16.msra.mxu0 %v1570_v24  ;;  %1497 = vmatprep.subr.bf16.mxu1 %v1496_v57  ;;  %v868_v24 = vld [vmem:[%s2244_s21 + $0x3c0] sm:$0xff]  ;;  %v790_v43 = vld [vmem:[%s2244_s21 + $0x150] sm:$0xff]  ;;  %v793_v44 = vld [vmem:[%s2244_s21 + $0x168] sm:$0xff]  ;;  %v1598_v46 = vpack.c.bf16 %v874_v37, %v872_v36 }
  0xb3   : > { %1573 = vmatprep.subr.bf16.mxu0 %v1572_v27  ;;  %v1506_v27 = vpack.c.bf16 %v782_v19, %v780_v18  ;;  %v1594_v34 = vpack.c.bf16 %v870_v25, %v868_v24  ;;  %v795_v45 = vld [vmem:[%s2244_s21 + $0x178] sm:$0xff]  ;;  %v876_v48 = vld [vmem:[%s2244_s21 + $0x400] sm:$0xff]  ;;  %v878_v49 = vld [vmem:[%s2244_s21 + $0x410] sm:$0xff] }
  0xb4   : > { %v883_v52 = vld [vmem:[%s2244_s21 + $0x438] sm:$0xff]  ;;  %v1516_v53 = vpack.c.bf16 %v795_v45, %v793_v44  ;;  %v792_v54 = vld [vmem:[%s2244_s21 + $0x160] sm:$0xff]  ;;  %v794_v55 = vld [vmem:[%s2244_s21 + $0x170] sm:$0xff]  ;;  %v1602_v60 = vpack.c.bf16 %v878_v49, %v876_v48 }
  0xb5   : > { %1499 = vmatpush1.bf16.msra.mxu1 %v1498_v3  ;;  %v797_v56 = vld [vmem:[%s2244_s21 + $0x188] sm:$0xff]  ;;  %v799_v57 = vld [vmem:[%s2244_s21 + $0x198] sm:$0xff]  ;;  %v743_v58 = vld [vmem:[%s2521_s0 + $0x8] sm:$0xff]  ;;  %v1518_v1 = vpack.c.bf16 %v794_v55, %v792_v54 }
  0xb6   : > { %1575 = vmatpush1.bf16.msra.mxu0 %v1574_v38  ;;  %1501 = vmatprep.subr.bf16.mxu1 %v1500_v5  ;;  %v877_v38 = vld [vmem:[%s2244_s21 + $0x408] sm:$0xff]  ;;  %v880_v61 = vld [vmem:[%s2244_s21 + $0x420] sm:$0xff]  ;;  %v887_v3 = vld [vmem:[%s2244_s21 + $0x458] sm:$0xff]  ;;  %v1520_v4 = vpack.c.bf16 %v799_v57, %v797_v56 }
  0xb7   : > { %1577 = vmatprep.subr.bf16.mxu0 %v1576_v39  ;;  %v1510_v39 = vpack.c.bf16 %v786_v31, %v784_v30  ;;  %v1600_v47 = vpack.c.bf16 %v879_v40, %v877_v38  ;;  %v744_v59 = vld [vmem:[%s2521_s0 + $0x10] sm:$0xff]  ;;  %1016 = vmatprep.mubr.f32.mxu1 %v743_v58  ;;  %v747_v2 = vld [vmem:[%s2521_s0 + $0x28] sm:$0xff]  ;;  %v798_v6 = vld [vmem:[%s2244_s21 + $0x190] sm:$0xff] }
  0xb8   : > { %v885_v0 = vld [vmem:[%s2244_s21 + $0x448] sm:$0xff]  ;;  %v796_v5 = vld [vmem:[%s2244_s21 + $0x180] sm:$0xff]  ;;  %v803_v8 = vld [vmem:[%s2244_s21 + $0x1b8] sm:$0xff] }
  0xb9   : > { %1503 = vmatpush1.bf16.msra.mxu1 %v1502_v15  ;;  %v801_v7 = vld [vmem:[%s2244_s21 + $0x1a8] sm:$0xff]  ;;  %v886_v12 = vld [vmem:[%s2244_s21 + $0x450] sm:$0xff]  ;;  %v1522_v14 = vpack.c.bf16 %v798_v6, %v796_v5  ;;  %v891_v15 = vld [vmem:[%s2244_s21 + $0x478] sm:$0xff] }
  0xba   : > { %1579 = vmatpush1.bf16.msra.mxu0 %v1578_v50  ;;  %1505 = vmatprep.subr.bf16.mxu1 %v1504_v17  ;;  %v881_v50 = vld [vmem:[%s2244_s21 + $0x428] sm:$0xff]  ;;  %v1524_v16 = vpack.c.bf16 %v803_v8, %v801_v7  ;;  %v800_v17 = vld [vmem:[%s2244_s21 + $0x1a0] sm:$0xff]  ;;  %v802_v18 = vld [vmem:[%s2244_s21 + $0x1b0] sm:$0xff] }
  0xbb   : > { %1581 = vmatprep.subr.bf16.mxu0 %v1580_v51  ;;  %v1514_v51 = vpack.c.bf16 %v790_v43, %v788_v42  ;;  %v889_v13 = vld [vmem:[%s2244_s21 + $0x468] sm:$0xff]  ;;  %v807_v20 = vld [vmem:[%s2244_s21 + $0x1d8] sm:$0xff]  ;;  %v890_v24 = vld [vmem:[%s2244_s21 + $0x470] sm:$0xff]  ;;  %v1526_v26 = vpack.c.bf16 %v802_v18, %v800_v17 }
  0xbc   : > { %v805_v19 = vld [vmem:[%s2244_s21 + $0x1c8] sm:$0xff]  ;;  %v806_v30 = vld [vmem:[%s2244_s21 + $0x1d0] sm:$0xff]  ;;  %v811_v32 = vld [vmem:[%s2244_s21 + $0x1f8] sm:$0xff] }
  0xbd   : > { %1507 = vmatpush1.bf16.msra.mxu1 %v1506_v27  ;;  %v893_v25 = vld [vmem:[%s2244_s21 + $0x488] sm:$0xff]  ;;  %v895_v27 = vld [vmem:[%s2244_s21 + $0x498] sm:$0xff]  ;;  %v1528_v28 = vpack.c.bf16 %v807_v20, %v805_v19  ;;  %v894_v36 = vld [vmem:[%s2244_s21 + $0x490] sm:$0xff] }
  0xbe   : > { %1583 = vmatpush1.bf16.msra.mxu0 %v1582_v62  ;;  %1509 = vmatprep.subr.bf16.mxu1 %v1508_v29  ;;  %v1604_v62 = vpack.c.bf16 %v883_v52, %v881_v50  ;;  %v804_v29 = vld [vmem:[%s2244_s21 + $0x1c0] sm:$0xff]  ;;  %v809_v31 = vld [vmem:[%s2244_s21 + $0x1e8] sm:$0xff]  ;;  %v810_v42 = vld [vmem:[%s2244_s21 + $0x1f0] sm:$0xff] }
  0xbf   : > { %1585 = vmatprep.subr.bf16.mxu0 %v1584_v63  ;;  %v882_v63 = vld [vmem:[%s2244_s21 + $0x430] sm:$0xff]  ;;  %v897_v37 = vld [vmem:[%s2244_s21 + $0x4a8] sm:$0xff]  ;;  %v1530_v38 = vpack.c.bf16 %v806_v30, %v804_v29  ;;  %v1532_v40 = vpack.c.bf16 %v811_v32, %v809_v31  ;;  %v1227_v43 = vld [vmem:[%s2242_s12 + $0x80] sm:$0xff] }
  0xc0   : > { %v1606_v9 = vpack.c.bf16 %v882_v63, %v880_v61  ;;  %v1228_v44 = vld [vmem:[%s2242_s12 + $0x88] sm:$0xff]  ;;  %v898_v48 = vld [vmem:[%s2244_s21 + $0x4b0] sm:$0xff]  ;;  %v901_v49 = vld [vmem:[%s2244_s21 + $0x4c8] sm:$0xff] }
  0xc1   : > { %1511 = vmatpush1.bf16.msra.mxu1 %v1510_v39  ;;  %v899_v39 = vld [vmem:[%s2244_s21 + $0x4b8] sm:$0xff]  ;;  %v1664_v52 = vpack.c.bf16 %v1228_v44, %v1227_v43  ;;  %v1212_v54 = vld [vmem:[%s2242_s12 + $0x8] sm:$0xff]  ;;  %v1229_v55 = vld [vmem:[%s2242_s12 + $0x90] sm:$0xff] }
  0xc2   : > { %1587 = vmatpush1.bf16.msra.mxu0 %v1586_v10  ;;  %1513 = vmatprep.subr.bf16.mxu1 %v1512_v41  ;;  %v1608_v10 = vpack.c.bf16 %v887_v3, %v885_v0  ;;  %v808_v41 = vld [vmem:[%s2244_s21 + $0x1e0] sm:$0xff]  ;;  %v1230_v56 = vld [vmem:[%s2242_s12 + $0x98] sm:$0xff]  ;;  %v905_v61 = vld [vmem:[%s2244_s21 + $0x4e8] sm:$0xff] }
  0xc3   : > { %1589 = vmatprep.subr.bf16.mxu0 %v1588_v11  ;;  %v884_v11 = vld [vmem:[%s2244_s21 + $0x440] sm:$0xff]  ;;  %v1534_v50 = vpack.c.bf16 %v810_v42, %v808_v41  ;;  %v907_v0 = vld [vmem:[%s2244_s21 + $0x4f8] sm:$0xff]  ;;  %v1214_v3 = vld [vmem:[%s2242_s12 + $0x18] sm:$0xff] }
  0xc4   : > { %v1610_v21 = vpack.c.bf16 %v886_v12, %v884_v11  ;;  %v900_v58 = vld [vmem:[%s2244_s21 + $0x4c0] sm:$0xff]  ;;  %v1628_v7 = vpack.c.bf16 %v907_v0, %v905_v61  ;;  %v911_v12 = vld [vmem:[%s2244_s21 + $0x518] sm:$0xff]  ;;  %v1234_v17 = vld [vmem:[%s2242_s12 + $0xb8] sm:$0xff] }
  0xc5   : > { %1515 = vmatpush1.bf16.msra.mxu1 %v1514_v51  ;;  %v903_v51 = vld [vmem:[%s2244_s21 + $0x4d8] sm:$0xff]  ;;  %v1232_v5 = vld [vmem:[%s2242_s12 + $0xa8] sm:$0xff]  ;;  %v1238_v41 = vld [vmem:[%s2242_s12 + $0xd8] sm:$0xff] }
  0xc6   : > { %1591 = vmatpush1.bf16.msra.mxu0 %v1590_v22  ;;  %1517 = vmatprep.subr.bf16.mxu1 %v1516_v53  ;;  %v1612_v22 = vpack.c.bf16 %v891_v15, %v889_v13  ;;  %v1211_v53 = vld [vmem:[%s2242_s12] sm:$0xff]  ;;  %v904_v8 = vld [vmem:[%s2244_s21 + $0x4e0] sm:$0xff] }
  0xc7   : > { %1593 = vmatprep.subr.bf16.mxu0 %v1592_v23  ;;  %v888_v23 = vld [vmem:[%s2244_s21 + $0x460] sm:$0xff]  ;;  %v1666_v63 = vpack.c.bf16 %v1212_v54, %v1211_v53  ;;  %v931_v0 = vld [vmem:[%s2244_s21 + $0x5b8] sm:$0xff] }
  0xc8   : > { %v1614_v33 = vpack.c.bf16 %v890_v24, %v888_v23  ;;  %v1216_v15 = vld [vmem:[%s2242_s12 + $0x28] sm:$0xff]  ;;  %v915_v24 = vld [vmem:[%s2244_s21 + $0x538] sm:$0xff] }
  0xc9   : > { %1519 = vmatpush1.bf16.msra.mxu1 %v1518_v1  ;;  %v1668_v1 = vpack.c.bf16 %v1230_v56, %v1229_v55  ;;  %v908_v20 = vld [vmem:[%s2244_s21 + $0x500] sm:$0xff]  ;;  %v922_v55 = vld [vmem:[%s2244_s21 + $0x570] sm:$0xff] }
  0xca   : > { %1595 = vmatpush1.bf16.msra.mxu0 %v1594_v34  ;;  %1521 = vmatprep.subr.bf16.mxu1 %v1520_v4  ;;  %v1616_v34 = vpack.c.bf16 %v895_v27, %v893_v25  ;;  %v1231_v4 = vld [vmem:[%s2242_s12 + $0xa0] sm:$0xff]  ;;  %v1218_v27 = vld [vmem:[%s2242_s12 + $0x38] sm:$0xff]  ;;  %v1236_v29 = vld [vmem:[%s2242_s12 + $0xc8] sm:$0xff] }
  0xcb   : > { %1597 = vmatprep.subr.bf16.mxu0 %v1596_v35  ;;  %v892_v35 = vld [vmem:[%s2244_s21 + $0x480] sm:$0xff]  ;;  %v1672_v13 = vpack.c.bf16 %v1232_v5, %v1231_v4  ;;  %v930_v4 = vld [vmem:[%s2244_s21 + $0x5b0] sm:$0xff]  ;;  %v933_v5 = vld [vmem:[%s2244_s21 + $0x5c8] sm:$0xff] }
  0xcc   : > { %v1618_v45 = vpack.c.bf16 %v894_v36, %v892_v35  ;;  %v912_v32 = vld [vmem:[%s2244_s21 + $0x520] sm:$0xff]  ;;  %v919_v36 = vld [vmem:[%s2244_s21 + $0x558] sm:$0xff] }
  0xcd   : > { %1523 = vmatpush1.bf16.msra.mxu1 %v1522_v14  ;;  %v1215_v14 = vld [vmem:[%s2242_s12 + $0x20] sm:$0xff]  ;;  %v916_v44 = vld [vmem:[%s2244_s21 + $0x540] sm:$0xff] }
  0xce   : > { %1599 = vmatpush1.bf16.msra.mxu0 %v1598_v46  ;;  %1525 = vmatprep.subr.bf16.mxu1 %v1524_v16  ;;  %v1620_v46 = vpack.c.bf16 %v899_v39, %v897_v37  ;;  %v1233_v16 = vld [vmem:[%s2242_s12 + $0xb0] sm:$0xff]  ;;  %v1674_v23 = vpack.c.bf16 %v1216_v15, %v1215_v14  ;;  %v1220_v39 = vld [vmem:[%s2242_s12 + $0x48] sm:$0xff] }
  0xcf   : > { %1601 = vmatprep.subr.bf16.mxu0 %v1600_v47  ;;  %v896_v47 = vld [vmem:[%s2244_s21 + $0x4a0] sm:$0xff]  ;;  %v1676_v25 = vpack.c.bf16 %v1234_v17, %v1233_v16  ;;  %v938_v16 = vld [vmem:[%s2244_s21 + $0x5f0] sm:$0xff] }
  0xd0   : > { %v1622_v57 = vpack.c.bf16 %v898_v48, %v896_v47  ;;  %v923_v48 = vld [vmem:[%s2244_s21 + $0x578] sm:$0xff]  ;;  %v920_v54 = vld [vmem:[%s2244_s21 + $0x560] sm:$0xff] }
  0xd1   : > { %1088 = vmatmul.mubr.f32.vlgmr.msra.gmra.mrb[0].mxu0 %v744_v59  ;;  %1527 = vmatpush1.bf16.msra.mxu1 %v1526_v26  ;;  %v1624_v59 = vpack.c.bf16 %v903_v51, %v901_v49  ;;  %v1217_v26 = vld [vmem:[%s2242_s12 + $0x30] sm:$0xff]  ;;  %v1222_v51 = vld [vmem:[%s2242_s12 + $0x58] sm:$0xff]  ;;  %v924_v61 = vld [vmem:[%s2244_s21 + $0x580] sm:$0xff] }
  0xd2   : > { %1603 = vmatpush1.bf16.msra.mxu0 %v1602_v60  ;;  %1158 = vmatprep.mubr.f32.mxu0 %v747_v2  ;;  %v902_v60 = vld [vmem:[%s2244_s21 + $0x4d0] sm:$0xff]  ;;  %v1213_v2 = vld [vmem:[%s2242_s12 + $0x10] sm:$0xff]  ;;  %v1678_v35 = vpack.c.bf16 %v1218_v27, %v1217_v26  ;;  %v936_v15 = vld [vmem:[%s2244_s21 + $0x5e0] sm:$0xff] }
  0xd3   : > { %1605 = vmatprep.subr.bf16.mxu0 %v1604_v62  ;;  %1529 = vmatprep.subr.bf16.mxu1 %v1528_v28  ;;  %v742_v62 = vld [vmem:[%s2521_s0] sm:$0xff]  ;;  %v1626_v6 = vpack.c.bf16 %v902_v60, %v900_v58  ;;  %v1670_v11 = vpack.c.bf16 %v1214_v3, %v1213_v2  ;;  %v928_v3 = vld [vmem:[%s2244_s21 + $0x5a0] sm:$0xff]  ;;  %v1662_v17 = vpack.c.bf16 %v938_v16, %v936_v15  ;;  %v1242_v26 = vld [vmem:[%s2242_s12 + $0xf8] sm:$0xff] }
  0xd4   : > { %v1235_v28 = vld [vmem:[%s2242_s12 + $0xc0] sm:$0xff] }
  0xd5   : > { %1531 = vmatpush1.bf16.msra.mxu1 %v1530_v38  ;;  %v1680_v37 = vpack.c.bf16 %v1236_v29, %v1235_v28  ;;  %v1219_v38 = vld [vmem:[%s2242_s12 + $0x40] sm:$0xff]  ;;  %v1225_v28 = vld [vmem:[%s2242_s12 + $0x70] sm:$0xff]  ;;  %v1226_v29 = vld [vmem:[%s2242_s12 + $0x78] sm:$0xff] }
  0xd6   : > { %1607 = vmatpush1.bf16.msra.mxu0 %v1606_v9  ;;  %1533 = vmatprep.subr.bf16.mxu1 %v1532_v40  ;;  %v906_v9 = vld [vmem:[%s2244_s21 + $0x4f0] sm:$0xff]  ;;  %v1237_v40 = vld [vmem:[%s2242_s12 + $0xd0] sm:$0xff]  ;;  %v1682_v47 = vpack.c.bf16 %v1220_v39, %v1219_v38  ;;  %v927_v58 = vld [vmem:[%s2244_s21 + $0x598] sm:$0xff] }
  0xd7   : > { %1609 = vmatprep.subr.bf16.mxu0 %v1608_v10  ;;  %v909_v10 = vld [vmem:[%s2244_s21 + $0x508] sm:$0xff]  ;;  %v1630_v18 = vpack.c.bf16 %v906_v9, %v904_v8  ;;  %v1684_v49 = vpack.c.bf16 %v1238_v41, %v1237_v40  ;;  %v932_v9 = vld [vmem:[%s2244_s21 + $0x5c0] sm:$0xff]  ;;  %v1755_v41 = vmov 0.0   ;;  %v1432_v15 = vld [vmem:[%s2525_s4] ss:$0 sm:$0xff] (!%p1431_p11) }
  0xd8   : > { %v1632_v19 = vpack.c.bf16 %v911_v12, %v909_v10  ;;  %v934_v10 = vld [vmem:[%s2244_s21 + $0x5d0] sm:$0xff]  ;;  %v939_v12 = vld [vmem:[%s2244_s21 + $0x5f8] sm:$0xff]  ;;  %v1424_v38 = vld [vmem:[%s2246_s13 + $0x28] sm:$0xff] }
  0xd9   : > { %1535 = vmatpush1.bf16.msra.mxu1 %v1534_v50  ;;  %v1221_v50 = vld [vmem:[%s2242_s12 + $0x50] sm:$0xff]  ;;  %v1423_v39 = vld [vmem:[%s2246_s13 + $0x20] sm:$0xff]  ;;  %vm1188_vm5 = vcmp.ge.f32.partialorder %v1424_v38, 0.25 }
  0xda   : > { %1611 = vmatpush1.bf16.msra.mxu0 %v1610_v21  ;;  %1665 = vmatprep.subr.bf16.mxu1 %v1664_v52  ;;  %v910_v21 = vld [vmem:[%s2244_s21 + $0x510] sm:$0xff]  ;;  %v1686_v56 = vpack.c.bf16 %v1222_v51, %v1221_v50  ;;  %vm1187_vm6 = vcmp.ge.f32.partialorder %v1423_v39, 0.25  ;;  %v1426_v51 = vsel %vm1188_vm5, 1.0, %v1755_v41 }
  0xdb   : > { %1613 = vmatprep.subr.bf16.mxu0 %v1612_v22  ;;  %v913_v22 = vld [vmem:[%s2244_s21 + $0x528] sm:$0xff]  ;;  %v1634_v30 = vpack.c.bf16 %v910_v21, %v908_v20  ;;  %v1240_v20 = vld [vmem:[%s2242_s12 + $0xe8] sm:$0xff] }
  0xdc   : > { %1017 = vmatmul.mubr.f32.vlgmr.msra.gmra.mrb[0].mxu1 %v742_v62  ;;  %v1636_v31 = vpack.c.bf16 %v915_v24, %v913_v22  ;;  %v926_v62 = vld [vmem:[%s2244_s21 + $0x590] sm:$0xff]  ;;  %v1223_v22 = vld [vmem:[%s2242_s12 + $0x60] sm:$0xff] }
  0xdd   : > { %1667 = vmatpush3.bf16.msra.mxu1 %v1666_v63  ;;  %v929_v63 = vld [vmem:[%s2244_s21 + $0x5a8] sm:$0xff] }
  0xde   : > { %1615 = vmatpush1.bf16.msra.mxu0 %v1614_v33  ;;  %1669 = vmatprep.subr.bf16.mxu1 %v1668_v1  ;;  %v914_v33 = vld [vmem:[%s2244_s21 + $0x530] sm:$0xff]  ;;  %v1650_v1 = vpack.c.bf16 %v926_v62, %v924_v61  ;;  %v1652_v2 = vpack.c.bf16 %v931_v0, %v929_v63 }
  0xdf   : > { %1617 = vmatprep.subr.bf16.mxu0 %v1616_v34  ;;  %v917_v34 = vld [vmem:[%s2244_s21 + $0x548] sm:$0xff]  ;;  %v1638_v42 = vpack.c.bf16 %v914_v33, %v912_v32 }
  0xe0   : > { %v1640_v43 = vpack.c.bf16 %v919_v36, %v917_v34  ;;  %v1166_v33 = vld [vmem:[%s2246_s13 + $0x8] sm:$0xff]  ;;  %v1420_v34 = vld [vmem:[%s2246_s13 + $0x18] sm:$0xff]  ;;  %v1419_v36 = vld [vmem:[%s2246_s13 + $0x10] sm:$0xff] }
  0xe1   : > { %1671 = vmatpush3.bf16.msra.mxu1 %v1670_v11  ;;  %v937_v11 = vld [vmem:[%s2244_s21 + $0x5e8] sm:$0xff]  ;;  %vm1168_vm1 = vcmp.ge.f32.partialorder %v1166_v33, 0.25  ;;  %vm1177_vm2 = vcmp.ge.f32.partialorder %v1420_v34, 0.25  ;;  %vm1176_vm4 = vcmp.ge.f32.partialorder %v1419_v36, 0.25 }
  0xe2   : > { %1619 = vmatpush1.bf16.msra.mxu0 %v1618_v45  ;;  %1673 = vmatprep.subr.bf16.mxu1 %v1672_v13  ;;  %v918_v45 = vld [vmem:[%s2244_s21 + $0x550] sm:$0xff]  ;;  %v1658_v13 = vpack.c.bf16 %v934_v10, %v932_v9  ;;  %v1660_v14 = vpack.c.bf16 %v939_v12, %v937_v11  ;;  %v1210_v10 = vld [vmem:[#allocation2] sm:$0xff] }
  0xe3   : > { %1621 = vmatprep.subr.bf16.mxu0 %v1620_v46  ;;  %v921_v46 = vld [vmem:[%s2244_s21 + $0x568] sm:$0xff]  ;;  %v1642_v52 = vpack.c.bf16 %v918_v45, %v916_v44  ;;  %v1421_v45 = vsel %vm1176_vm4, 1.0, %v1755_v41 }
  0xe4   : > { %v1644_v53 = vpack.c.bf16 %v923_v48, %v921_v46  ;;  %v1428_v46 = vld [vmem:[%s2246_s13 + $0x38] sm:$0xff] }
  0xe5   : > { %1675 = vmatpush3.bf16.msra.mxu1 %v1674_v23  ;;  %v1224_v23 = vld [vmem:[%s2242_s12 + $0x68] sm:$0xff]  ;;  %vm1199_vm7 = vcmp.ge.f32.partialorder %v1428_v46, 0.25 }
  0xe6   : > { %1623 = vmatpush1.bf16.msra.mxu0 %v1622_v57  ;;  %1677 = vmatprep.subr.bf16.mxu1 %v1676_v25  ;;  %v925_v57 = vld [vmem:[%s2244_s21 + $0x588] sm:$0xff]  ;;  %v1690_v24 = vpack.c.bf16 %v1224_v23, %v1223_v22 }
  0xe7   : > { %1625 = vmatprep.subr.bf16.mxu0 %v1624_v59  ;;  %v1646_v59 = vpack.c.bf16 %v922_v55, %v920_v54  ;;  %v1648_v60 = vpack.c.bf16 %v927_v58, %v925_v57  ;;  %v1241_v25 = vld [vmem:[%s2242_s12 + $0xf0] sm:$0xff]  ;;  %v1425_v54 = vsel %vm1187_vm6, 1.0, %v1755_v41  ;;  %v1430_v58 = vsel %vm1199_vm7, 1.0, %v1755_v41 }
  0xe8   : > { %v1692_v27 = vpack.c.bf16 %v1242_v26, %v1241_v25 }
  0xe9   : > { %1679 = vmatpush3.bf16.msra.mxu1 %v1678_v35  ;;  %v1165_v35 = vld [vmem:[%s2246_s13] sm:$0xff] }
  0xea   : > { %1627 = vmatpush1.bf16.msra.mxu0 %v1626_v6  ;;  %1681 = vmatprep.subr.bf16.mxu1 %v1680_v37  ;;  %v935_v6 = vld [vmem:[%s2244_s21 + $0x5d8] sm:$0xff]  ;;  %v942_v37 = vlaneseq  ;;  %vm1167_vm3 = vcmp.ge.f32.partialorder %v1165_v35, 0.25 }
  0xeb   : > { %1629 = vmatprep.subr.bf16.mxu0 %v1628_v7  ;;  %v1654_v7 = vpack.c.bf16 %v930_v4, %v928_v3  ;;  %v1656_v8 = vpack.c.bf16 %v935_v6, %v933_v5  ;;  %v1417_v44 = vsel %vm1167_vm3, 1.0, %v1755_v41 }
  0xec   : > { %v943_v40 = vshrl.u32 %v942_v37, 7  ;;  %v1182_v50 = vadd.f32 %v1421_v45, %v1417_v44 }
  0xed   : > { %1683 = vmatpush3.bf16.msra.mxu1 %v1682_v47  ;;  %v1427_v47 = vld [vmem:[%s2246_s13 + $0x30] sm:$0xff] }
  0xee   : > { %1631 = vmatpush1.bf16.msra.mxu0 %v1630_v18  ;;  %1685 = vmatprep.subr.bf16.mxu1 %v1684_v49  ;;  %v746_v18 = vld [vmem:[%s2521_s0 + $0x20] sm:$0xff]  ;;  %v944_v49 = vsub.s32 0, %v943_v40  ;;  %vm1198_vm8 = vcmp.ge.f32.partialorder %v1427_v47, 0.25  ;;  %v1193_v57 = vadd.f32 %v1425_v54, %v1182_v50 }
  0xef   : > { %1633 = vmatprep.subr.bf16.mxu0 %v1632_v19  ;;  %v1239_v19 = vld [vmem:[%s2242_s12 + $0xe0] sm:$0xff] }
  0xf0   : > { %v1688_v21 = vpack.c.bf16 %v1240_v20, %v1239_v19 }
  0xf1   : > { %1687 = vmatpush3.bf16.msra.mxu1 %v1686_v56 }
  0xf2   : > { %1635 = vmatpush1.bf16.msra.mxu0 %v1634_v30  ;;  %1689 = vmatprep.subr.bf16.mxu1 %v1688_v21  ;;  %v1694_v30 = vpack.c.bf16 %v1226_v29, %v1225_v28 }
  0xf3   : > { %1637 = vmatprep.subr.bf16.mxu0 %v1636_v31 }
  0xf5   : > { %1691 = vmatpush3.bf16.msra.mxu1 %v1690_v24 }
  0xf6   : > { %1639 = vmatpush1.bf16.msra.mxu0 %v1638_v42  ;;  %1693 = vmatprep.subr.bf16.mxu1 %v1692_v27  ;;  %v1418_v42 = vsel %vm1168_vm1, 1.0, %v1755_v41 }
  0xf7   : > { %1641 = vmatprep.subr.bf16.mxu0 %v1640_v43  ;;  %v1422_v43 = vsel %vm1177_vm2, 1.0, %v1755_v41 }
  0xf8   : > { %v1183_v48 = vadd.f32 %v1422_v43, %v1418_v42 }
  0xf9   : > { %1695 = vmatpush3.bf16.msra.mxu1 %v1694_v30 }
  0xfa   : > { %1643 = vmatpush1.bf16.msra.mxu0 %v1642_v52  ;;  %v940_v52 = vld [vmem:[%s727_s9] sm:$0x3]  ;;  %v1194_v55 = vadd.f32 %v1426_v51, %v1183_v48 }
  0xfb   : > { %1645 = vmatprep.subr.bf16.mxu0 %v1644_v53  ;;  %v948_v53 = vsub.s32 1, %v943_v40  ;;  %v945_v56 = vrot.slane %v940_v52, %v944_v49 }
  0xfc   : > { %v1205_v61 = vadd.f32 %v1430_v58, %v1194_v55 }
  0xfe   : > { %1647 = vmatpush1.bf16.msra.mxu0 %v1646_v59  ;;  %v949_v59 = vrot.slane %v940_v52, %v948_v53 }
  0xff   : > { %1649 = vmatprep.subr.bf16.mxu0 %v1648_v60  ;;  %v1429_v60 = vsel %vm1198_vm8, 1.0, %v1755_v41 }
 0x100   : > { %v1204_v63 = vadd.f32 %v1429_v60, %v1193_v57 }
 0x102   : > { %1651 = vmatpush1.bf16.msra.mxu0 %v1650_v1  ;;  %v1206_v4 = vmul.f32 0.33333334, %v1204_v63 }
 0x103   : > { %1653 = vmatprep.subr.bf16.mxu0 %v1652_v2  ;;  %v1207_v2 = vmul.f32 0.33333334, %v1205_v61 }
 0x106   : > { %1655 = vmatpush1.bf16.msra.mxu0 %v1654_v7 }
 0x107   : > { %1657 = vmatprep.subr.bf16.mxu0 %v1656_v8 }
 0x10a   : > { %1659 = vmatpush1.bf16.msra.mxu0 %v1658_v13 }
 0x10b   : > { %1661 = vmatprep.subr.bf16.mxu0 %v1660_v14 }
 0x10e   : > { %1663 = vmatpush1.bf16.msra.mxu0 %v1662_v17 }
 0x111   : > { %1159 = vmatmul.mubr.f32.vlgmr.msra.gmra.mrb[0].mxu0 %v746_v18 }
 0x1af   : > { %v1018_v31 = vpop.f32.mrb[0].mxu1 }
 0x1b0   : > { %v1020_v32 = vpop.f32.mrb[1].mxu1  ;;  %v1019_v62 = vadd.f32 %v1018_v31, %v945_v56 }
 0x1b1   : > { %v1021_v0 = vadd.f32 %v1020_v32, %v949_v59 }
 0x1e4   : > { %v1160_v1 = vpop.f32.mrb[0].mxu0 }
 0x1e5   : > { %v1697_v3 = vadd.f32 %v1160_v1, %v1019_v62  ;;  %v1162_v5 = vpop.f32.mrb[1].mxu0 }
 0x1e6   : > { %v1699_v6 = vadd.f32 %v1162_v5, %v1021_v0 }
 0x1e7   : > { %v1208_v8 = vmul.f32 %v1697_v3, %v1206_v4 }
 0x1e8   : > { %v1209_v7 = vmul.f32 %v1699_v6, %v1207_v2 }
 0x1ea   : > { %1307 = vmatprep.mubr.f32.mxu1 %v1209_v7 }
 0x1eb   : > { %1308 = vmatmul.mubr.f32.vlgmr.msra.gmra.mrb[2].mxu1 %v1208_v8 }
 0x2be   : > { %v1469_v9 = vpop.f32.mrb[2].mxu1  ;;  %1319 = sbr.rel (%p1431_p11) target bundleno = 719 (0x2cf), region = 98 }
 0x2bf   : > { %v1470_v11 = vpop.f32.mrb[3].mxu1 }
 0x2c0   : > { %v1471_v12 = vadd.f32 %v1470_v11, %v1469_v9 }
 0x2c2   : > { %v1313_v13 = vadd.f32 %v1471_v12, %v1210_v10 }
 0x2c4   : > { %1315 = vst.msk [vmem:[#allocation2] sm:$0xff] %vm1314_vm9, %v1313_v13 }
 0x2cb   : > { %v1320_v14 = vld [vmem:[#allocation2] sm:$0xff] }
 0x2cc   : > { %v1328_v16 = vadd.f32 %v1432_v15, %v1320_v14 }
 0x2ce   : > { %1329 = vst.msk [vmem:[%s2527_s6] sm:$0xff] %vm1314_vm9, %v1328_v16 }
 0x2cf PF: > { %p13_p12 = scmp.ge.s32.totalorder %s1810_s25, 6   ;;  %s2529_s21 = smov %s1748_s22 }
 0x2d0   : > { %s2530_s22 = smov %s1819_s28  ;;  %s2531_s23 = smov %s1810_s25 }
 0x2d1   :  { %15 = sbr.rel (!%p13_p12) target bundleno = 2 (0x2), region = 146 }

</bundles_post_ra>
